<compile_context>
chip_gen: v7x
topology: tpu7x:2x2x1
jax: 0.10.0
libtpu: 0.0.40
codegen_flags: <defaults>
</compile_context>

<pallas_src>
import functools

import jax
import jax.numpy as jnp
from jax import lax
from jax.experimental import pallas as pl
from jax.experimental.pallas import tpu as pltpu


_INV_SQRT2 = 0.7071067811865476


def _gelu(x):
    # exact (erf-based) GELU, matching nn.GELU() default (approximate='none')
    return 0.5 * x * (1.0 + lax.erf(x * _INV_SQRT2))


# ----------------------------- fused kernel -----------------------------------
# Layout: one padded image row per sublane, lanes hold (padded-pixel, channel).
# conv_s / conv2 / conv3 are block-diagonal matmuls over pixels; the 3x3 conv
# needs the dy=-1/0/+1 row-shifted activations (2 pltpu.rolls + aligned row
# windows) while the dx taps live entirely inside the prebuilt weights.
def _sirmlp_kernel(B, H, W, ch,
                   x_ref, ws_ref, w1u_ref, w1m_ref, w1d_ref,
                   s1_ref, t1_ref, w2_ref, w3_ref, t3_ref, o_ref):
    RPI = x_ref.shape[1]                 # padded rows per image (multiple of 8)
    WC = W * ch
    nrows = B * RPI

    # conv_s (1x1) with bias + eval-mode BN + padding mask folded into ws_ref
    # (augmented mask channel): h == 0 on every spatial-padding row/column.
    x = x_ref[...].reshape(nrows, x_ref.shape[-1])
    h = jnp.dot(x, ws_ref[...], preferred_element_type=jnp.float32)  # (B*RPI, Wp*ch)

    # dy = -1 / +1 row-shifted copies (XLU rolls); padding rows are zero, so the
    # wrap-around rows (adjacent image's padding) contribute exact zeros.
    hu = pltpu.roll(h, 1, axis=0)             # hu[r] = h[r-1]
    hd = pltpu.roll(h, nrows - 1, axis=0)     # == roll by -1: hd[r] = h[r+1]

    def window(a):                            # per-image valid rows, aligned slices
        parts = [a[b * RPI:b * RPI + H, :] for b in range(B)]
        return parts[0] if B == 1 else jnp.concatenate(parts, axis=0)

    # 3x3 conv: dx taps are encoded in the (Wp*ch, W*ch) weights; the middle
    # weight also carries a selection block that yields the residual for free.
    pm = jnp.dot(window(h), w1m_ref[...], preferred_element_type=jnp.float32)
    conv1 = (pm[:, :WC]
             + jnp.dot(window(hu), w1u_ref[...], preferred_element_type=jnp.float32)
             + jnp.dot(window(hd), w1d_ref[...], preferred_element_type=jnp.float32))
    resid = pm[:, WC:]                                        # (B*H, W*ch)

    mid = _gelu(conv1) + resid                                # gelu(conv1) + residual
    mid = mid * s1_ref[...] + t1_ref[...]                     # bn1 (folded, eval)
    z = _gelu(jnp.dot(mid, w2_ref[...], preferred_element_type=jnp.float32))
    out = jnp.dot(z, w3_ref[...], preferred_element_type=jnp.float32) + t3_ref[...]
    o_ref[...] = out.reshape(o_ref.shape)                     # (B, H, W*out_dim), lane-dense


# ------------------------------- wrapper --------------------------------------
def sirmlp_forward(x_nchw, params, images_per_step=None):
    N, Cin, H, W = x_nchw.shape
    C = params["w_s"].shape[1]
    D = params["w3"].shape[1]
    Wp = W + 2                                     # 1 zero pad column each side
    RPI = -(-(H + 1) // 8) * 8                     # rows per image, multiple of 8

    if images_per_step is None:
        B = 1
        for cand in range(N // 2, 0, -1):          # largest B keeping >=2 grid steps
            if N % cand == 0:
                B = cand
                break
    else:
        B = images_per_step
    assert N % B == 0

    # ---- inputs: NCHW -> row-per-sublane, (pixel x channel) in lanes ----------
    x = jnp.transpose(x_nchw, (0, 2, 3, 1)).astype(jnp.float32)       # NHWC
    xp = jnp.pad(x, ((0, 0), (0, 0), (1, 1), (0, 0)))                 # pad columns
    mcol = jnp.pad(jnp.ones((W,), jnp.float32), (1, 1))               # 0/1 mask per column
    mask = jnp.broadcast_to(mcol[None, None, :, None], (N, H, Wp, 1))
    x_aug = jnp.concatenate([xp, mask], axis=-1).reshape(N, H, Wp * (Cin + 1))
    x_aug = jnp.pad(x_aug, ((0, 0), (0, RPI - H), (0, 0)))            # zero pad rows

    # ---- fold params into lane-structured weights -----------------------------
    eyeC = jnp.eye(C, dtype=jnp.float32)
    xin = jnp.arange(Wp)[:, None]
    xout = jnp.arange(W)[None, :]

    def pixmap(sel, w):   # (Wp,W) selector x (Ci,Co) -> (Wp*Ci, W*Co)
        return jnp.einsum("XY,ij->XiYj", sel.astype(jnp.float32), w).reshape(
            Wp * w.shape[0], W * w.shape[1])

    # conv_s: bias + eval BN + mask folded into one augmented, block-diag weight
    shift_s = params["b_s"] * params["bn_s_scale"] + params["bn_s_shift"]
    ws_aug = jnp.concatenate([params["w_s"] * params["bn_s_scale"][None, :],
                              shift_s[None, :]], axis=0)              # (Cin+1, C)
    ws_big = jnp.kron(jnp.eye(Wp, dtype=jnp.float32), ws_aug)         # (Wp*(Cin+1), Wp*C)

    # conv1 (3x3): dx folded into the weights; middle weight carries the residual
    w1 = params["w1"]                                                 # (9, C, C) tap-major
    w1_dy = [sum(pixmap(xin - xout == dx, w1[dy * 3 + dx]) for dx in range(3))
             for dy in range(3)]                                      # 3 x (Wp*C, W*C)
    sel_mid = pixmap(xin - xout == 1, eyeC)                           # residual selector
    w1_mid = jnp.concatenate([w1_dy[1], sel_mid], axis=1)             # (Wp*C, 2*W*C)

    w2_big = jnp.kron(jnp.eye(W, dtype=jnp.float32), params["w2"])    # (W*C, W*4C)
    w3_big = jnp.kron(jnp.eye(W, dtype=jnp.float32),
                      params["w3"] * params["bn3_scale"][None, :])    # (W*4C, W*D)

    tile = lambda v: jnp.tile(v, W)[None, :]
    s1_t, t1_t = tile(params["bn1_scale"]), tile(params["bn1_shift"])
    t3_t = tile(params["bn3_shift"])

    kernel = functools.partial(_sirmlp_kernel, B, H, W, C)

    def wspec(shape):                                                 # grid-invariant operand
        return pl.BlockSpec(shape, lambda n, _nd=len(shape): (0,) * _nd)

    out = pl.pallas_call(
        kernel,
        out_shape=jax.ShapeDtypeStruct((N, H, W * D), jnp.float32),
        grid_spec=pltpu.PrefetchScalarGridSpec(
            num_scalar_prefetch=0,
            grid=(N // B,),
            in_specs=[
                pl.BlockSpec((B, RPI, Wp * (Cin + 1)), lambda n: (n, 0, 0)),
                wspec(ws_big.shape),
                wspec(w1_dy[0].shape), wspec(w1_mid.shape), wspec(w1_dy[2].shape),
                wspec((1, W * C)), wspec((1, W * C)),
                wspec(w2_big.shape), wspec(w3_big.shape), wspec((1, W * D)),
            ],
            out_specs=pl.BlockSpec((B, H, W * D), lambda n: (n, 0, 0)),
        ),
        compiler_params=pltpu.CompilerParams(
            dimension_semantics=("parallel",),
            vmem_limit_bytes=32 * 1024 * 1024,
        ),
    )(x_aug, ws_big, w1_dy[0], w1_mid, w1_dy[2],
      s1_t, t1_t, w2_big, w3_big, t3_t)

    # lane-dense (N, H, W*out_dim) -> NCHW (no pad/crop needed)
    return jnp.transpose(out.reshape(N, H, W, D), (0, 3, 1, 2))


# --------------------------- deterministic params -----------------------------
def make_params(key, inp_dim, ch_int, out_dim, eps=1e-5):
    ks = jax.random.split(key, 16)
    u = lambda k, s, lo=-0.3, hi=0.3: jax.random.uniform(k, s, jnp.float32, lo, hi)

    def fold_bn(gamma, beta, mean, var):
        scale = gamma / jnp.sqrt(var + eps)
        return scale, beta - mean * scale

    # conv_s: 1x1, bias=True, bn=True   (torch weight (C,Cin,1,1) -> (Cin,C))
    w_s = u(ks[0], (inp_dim, ch_int))
    b_s = u(ks[1], (ch_int,))
    bn_s_scale, bn_s_shift = fold_bn(
        u(ks[2], (ch_int,), 0.8, 1.2), u(ks[3], (ch_int,), -0.1, 0.1),
        u(ks[4], (ch_int,), -0.1, 0.1), u(ks[5], (ch_int,), 0.5, 1.5))

    # conv1: 3x3, bias=False  (torch (C,C,3,3) -> per-tap (Cin,C), tap-major)
    w1 = u(ks[6], (9, ch_int, ch_int))
    bn1_scale, bn1_shift = fold_bn(
        u(ks[7], (ch_int,), 0.8, 1.2), u(ks[8], (ch_int,), -0.1, 0.1),
        u(ks[9], (ch_int,), -0.1, 0.1), u(ks[10], (ch_int,), 0.5, 1.5))

    # conv2: 1x1, bias=False
    w2 = u(ks[11], (ch_int, 4 * ch_int))

    # conv3: 1x1, bias=False, bn=True
    w3 = u(ks[12], (4 * ch_int, out_dim))
    bn3_scale, bn3_shift = fold_bn(
        u(ks[13], (out_dim,), 0.8, 1.2), u(ks[14], (out_dim,), -0.1, 0.1),
        u(ks[15], (out_dim,), -0.1, 0.1),
        jax.random.uniform(jax.random.fold_in(key, 99), (out_dim,), jnp.float32, 0.5, 1.5))

    return dict(w_s=w_s, b_s=b_s, bn_s_scale=bn_s_scale, bn_s_shift=bn_s_shift,
                w1=w1, bn1_scale=bn1_scale, bn1_shift=bn1_shift,
                w2=w2, w3=w3, bn3_scale=bn3_scale, bn3_shift=bn3_shift)


# ------------------------------ pure-JAX reference ----------------------------
def sirmlp_reference(x_nchw, params):
    N, Cin, H, W = x_nchw.shape
    x = jnp.transpose(x_nchw, (0, 2, 3, 1))
    h = jnp.einsum("nhwc,cd->nhwd", x, params["w_s"]) + params["b_s"]
    h = h * params["bn_s_scale"] + params["bn_s_shift"]
    hp = jnp.pad(h, ((0, 0), (1, 1), (1, 1), (0, 0)))
    out = sum(
        jnp.einsum("nhwc,cd->nhwd", hp[:, dy:dy + H, dx:dx + W, :],
                   params["w1"][dy * 3 + dx])
        for dy in range(3) for dx in range(3))
    out = jax.nn.gelu(out, approximate=False) + h
    out = out * params["bn1_scale"] + params["bn1_shift"]
    out = jax.nn.gelu(jnp.einsum("nhwc,cd->nhwd", out, params["w2"]),
                      approximate=False)
    out = jnp.einsum("nhwc,cd->nhwd", out, params["w3"])
    out = out * params["bn3_scale"] + params["bn3_shift"]
    return jnp.transpose(out, (0, 3, 1, 2))


if __name__ == "__main__":
    key = jax.random.PRNGKey(0)
    k_x, k_p = jax.random.split(key)

    N, inp_dim, H, W = 2, 4, 16, 16
    ch_int, out_dim = 8, 16

    x = jax.random.normal(k_x, (N, inp_dim, H, W), jnp.float32)
    params = make_params(k_p, inp_dim, ch_int, out_dim)

    out = jax.block_until_ready(jax.jit(sirmlp_forward)(x, params))
    ref = jax.block_until_ready(sirmlp_reference(x, params))

    assert out.shape == (N, out_dim, H, W), out.shape
    assert jnp.allclose(out, ref, rtol=1e-3, atol=1e-3), float(jnp.max(jnp.abs(out - ref)))

    print("KERNEL_OK")
</pallas_src>

<mosaic_0001>
module attributes {stable_mosaic.version = 11 : i64} {
  func.func @_sirmlp_kernel(%arg0: i32, %arg1: memref<1x24x90xf32, #tpu.memory_space<vmem>>, %arg2: memref<90x144xf32, #tpu.memory_space<vmem>>, %arg3: memref<144x128xf32, #tpu.memory_space<vmem>>, %arg4: memref<144x256xf32, #tpu.memory_space<vmem>>, %arg5: memref<144x128xf32, #tpu.memory_space<vmem>>, %arg6: memref<1x128xf32, #tpu.memory_space<vmem>>, %arg7: memref<1x128xf32, #tpu.memory_space<vmem>>, %arg8: memref<128x512xf32, #tpu.memory_space<vmem>>, %arg9: memref<512x256xf32, #tpu.memory_space<vmem>>, %arg10: memref<1x256xf32, #tpu.memory_space<vmem>>, %arg11: memref<1x16x256xf32, #tpu.memory_space<vmem>>) attributes {dimension_semantics = [#tpu.dimension_semantics<parallel>], iteration_bounds = array<i64: 2>, scalar_prefetch = 0 : i64, scratch_operands = 0 : i64, tpu.core_type = #tpu.core_type<tc>, window_params = [{transform_indices = @transform_0, window_bounds = array<i64: 1, 24, 90>}, {pipeline_mode = #tpu.pipeline_mode<synchronous>, transform_indices = @transform_1, window_bounds = array<i64: 90, 144>}, {pipeline_mode = #tpu.pipeline_mode<synchronous>, transform_indices = @transform_2, window_bounds = array<i64: 144, 128>}, {pipeline_mode = #tpu.pipeline_mode<synchronous>, transform_indices = @transform_3, window_bounds = array<i64: 144, 256>}, {pipeline_mode = #tpu.pipeline_mode<synchronous>, transform_indices = @transform_4, window_bounds = array<i64: 144, 128>}, {pipeline_mode = #tpu.pipeline_mode<synchronous>, transform_indices = @transform_5, window_bounds = array<i64: 1, 128>}, {pipeline_mode = #tpu.pipeline_mode<synchronous>, transform_indices = @transform_6, window_bounds = array<i64: 1, 128>}, {pipeline_mode = #tpu.pipeline_mode<synchronous>, transform_indices = @transform_7, window_bounds = array<i64: 128, 512>}, {pipeline_mode = #tpu.pipeline_mode<synchronous>, transform_indices = @transform_8, window_bounds = array<i64: 512, 256>}, {pipeline_mode = #tpu.pipeline_mode<synchronous>, transform_indices = @transform_9, window_bounds = array<i64: 1, 256>}, {transform_indices = @transform_10, window_bounds = array<i64: 1, 16, 256>}]} {
    %c0 = arith.constant 0 : index
    %c0_0 = arith.constant 0 : index
    %c0_1 = arith.constant 0 : index
    %0 = vector.load %arg1[%c0, %c0_0, %c0_1] : memref<1x24x90xf32, #tpu.memory_space<vmem>>, vector<1x24x90xf32>
    %1 = vector.shape_cast %0 : vector<1x24x90xf32> to vector<24x90xf32>
    %c0_2 = arith.constant 0 : index
    %c0_3 = arith.constant 0 : index
    %2 = vector.load %arg2[%c0_2, %c0_3] : memref<90x144xf32, #tpu.memory_space<vmem>>, vector<90x144xf32>
    %cst = arith.constant dense<0.000000e+00> : vector<24x144xf32>
    %3 = tpu.matmul %1, %2, %cst {dimension_numbers = #tpu.dot_dimension_numbers<[1], [0], [0], [1], [0, 0, 1, 1], [], []>} : vector<24x90xf32>, vector<90x144xf32>, vector<24x144xf32> -> vector<24x144xf32>
    %c1_i32 = arith.constant 1 : i32
    %4 = tpu.dynamic_rotate %3 by %c1_i32 dim 0 : vector<24x144xf32>, i32 -> vector<24x144xf32>
    %c23_i32 = arith.constant 23 : i32
    %5 = tpu.dynamic_rotate %3 by %c23_i32 dim 0 : vector<24x144xf32>, i32 -> vector<24x144xf32>
    %6 = vector.extract_strided_slice %3 {offsets = [0, 0], sizes = [16, 144], strides = [1, 1]} : vector<24x144xf32> to vector<16x144xf32>
    %c0_4 = arith.constant 0 : index
    %c0_5 = arith.constant 0 : index
    %7 = vector.load %arg4[%c0_4, %c0_5] : memref<144x256xf32, #tpu.memory_space<vmem>>, vector<144x256xf32>
    %cst_6 = arith.constant dense<0.000000e+00> : vector<16x256xf32>
    %8 = tpu.matmul %6, %7, %cst_6 {dimension_numbers = #tpu.dot_dimension_numbers<[1], [0], [0], [1], [0, 0, 1, 1], [], []>} : vector<16x144xf32>, vector<144x256xf32>, vector<16x256xf32> -> vector<16x256xf32>
    %9 = vector.extract_strided_slice %8 {offsets = [0, 0], sizes = [16, 128], strides = [1, 1]} : vector<16x256xf32> to vector<16x128xf32>
    %10 = vector.extract_strided_slice %4 {offsets = [0, 0], sizes = [16, 144], strides = [1, 1]} : vector<24x144xf32> to vector<16x144xf32>
    %c0_7 = arith.constant 0 : index
    %c0_8 = arith.constant 0 : index
    %11 = vector.load %arg3[%c0_7, %c0_8] : memref<144x128xf32, #tpu.memory_space<vmem>>, vector<144x128xf32>
    %cst_9 = arith.constant dense<0.000000e+00> : vector<16x128xf32>
    %12 = tpu.matmul %10, %11, %cst_9 {dimension_numbers = #tpu.dot_dimension_numbers<[1], [0], [0], [1], [0, 0, 1, 1], [], []>} : vector<16x144xf32>, vector<144x128xf32>, vector<16x128xf32> -> vector<16x128xf32>
    %13 = arith.addf %9, %12 : vector<16x128xf32>
    %14 = vector.extract_strided_slice %5 {offsets = [0, 0], sizes = [16, 144], strides = [1, 1]} : vector<24x144xf32> to vector<16x144xf32>
    %c0_10 = arith.constant 0 : index
    %c0_11 = arith.constant 0 : index
    %15 = vector.load %arg5[%c0_10, %c0_11] : memref<144x128xf32, #tpu.memory_space<vmem>>, vector<144x128xf32>
    %cst_12 = arith.constant dense<0.000000e+00> : vector<16x128xf32>
    %16 = tpu.matmul %14, %15, %cst_12 {dimension_numbers = #tpu.dot_dimension_numbers<[1], [0], [0], [1], [0, 0, 1, 1], [], []>} : vector<16x144xf32>, vector<144x128xf32>, vector<16x128xf32> -> vector<16x128xf32>
    %17 = arith.addf %13, %16 : vector<16x128xf32>
    %18 = vector.extract_strided_slice %8 {offsets = [0, 128], sizes = [16, 128], strides = [1, 1]} : vector<16x256xf32> to vector<16x128xf32>
    %cst_13 = arith.constant 5.000000e-01 : f32
    %19 = vector.broadcast %cst_13 : f32 to vector<16x128xf32>
    %20 = arith.mulf %19, %17 : vector<16x128xf32>
    %cst_14 = arith.constant 0.707106769 : f32
    %21 = vector.broadcast %cst_14 : f32 to vector<16x128xf32>
    %22 = arith.mulf %17, %21 : vector<16x128xf32>
    %23 = math.erf %22 : vector<16x128xf32>
    %cst_15 = arith.constant 1.000000e+00 : f32
    %24 = vector.broadcast %cst_15 : f32 to vector<16x128xf32>
    %25 = arith.addf %24, %23 : vector<16x128xf32>
    %26 = arith.mulf %20, %25 : vector<16x128xf32>
    %27 = arith.addf %26, %18 : vector<16x128xf32>
    %c0_16 = arith.constant 0 : index
    %c0_17 = arith.constant 0 : index
    %28 = vector.load %arg6[%c0_16, %c0_17] : memref<1x128xf32, #tpu.memory_space<vmem>>, vector<1x128xf32>
    %29 = vector.broadcast %28 : vector<1x128xf32> to vector<16x128xf32>
    %30 = arith.mulf %27, %29 : vector<16x128xf32>
    %c0_18 = arith.constant 0 : index
    %c0_19 = arith.constant 0 : index
    %31 = vector.load %arg7[%c0_18, %c0_19] : memref<1x128xf32, #tpu.memory_space<vmem>>, vector<1x128xf32>
    %32 = vector.broadcast %31 : vector<1x128xf32> to vector<16x128xf32>
    %33 = arith.addf %30, %32 : vector<16x128xf32>
    %c0_20 = arith.constant 0 : index
    %c0_21 = arith.constant 0 : index
    %34 = vector.load %arg8[%c0_20, %c0_21] : memref<128x512xf32, #tpu.memory_space<vmem>>, vector<128x512xf32>
    %cst_22 = arith.constant dense<0.000000e+00> : vector<16x512xf32>
    %35 = tpu.matmul %33, %34, %cst_22 {dimension_numbers = #tpu.dot_dimension_numbers<[1], [0], [0], [1], [0, 0, 1, 1], [], []>} : vector<16x128xf32>, vector<128x512xf32>, vector<16x512xf32> -> vector<16x512xf32>
    %cst_23 = arith.constant 5.000000e-01 : f32
    %36 = vector.broadcast %cst_23 : f32 to vector<16x512xf32>
    %37 = arith.mulf %36, %35 : vector<16x512xf32>
    %cst_24 = arith.constant 0.707106769 : f32
    %38 = vector.broadcast %cst_24 : f32 to vector<16x512xf32>
    %39 = arith.mulf %35, %38 : vector<16x512xf32>
    %40 = math.erf %39 : vector<16x512xf32>
    %cst_25 = arith.constant 1.000000e+00 : f32
    %41 = vector.broadcast %cst_25 : f32 to vector<16x512xf32>
    %42 = arith.addf %41, %40 : vector<16x512xf32>
    %43 = arith.mulf %37, %42 : vector<16x512xf32>
    %c0_26 = arith.constant 0 : index
    %c0_27 = arith.constant 0 : index
    %44 = vector.load %arg9[%c0_26, %c0_27] : memref<512x256xf32, #tpu.memory_space<vmem>>, vector<512x256xf32>
    %cst_28 = arith.constant dense<0.000000e+00> : vector<16x256xf32>
    %45 = tpu.matmul %43, %44, %cst_28 {dimension_numbers = #tpu.dot_dimension_numbers<[1], [0], [0], [1], [0, 0, 1, 1], [], []>} : vector<16x512xf32>, vector<512x256xf32>, vector<16x256xf32> -> vector<16x256xf32>
    %c0_29 = arith.constant 0 : index
    %c0_30 = arith.constant 0 : index
    %46 = vector.load %arg10[%c0_29, %c0_30] : memref<1x256xf32, #tpu.memory_space<vmem>>, vector<1x256xf32>
    %47 = vector.broadcast %46 : vector<1x256xf32> to vector<16x256xf32>
    %48 = arith.addf %45, %47 : vector<16x256xf32>
    %49 = vector.shape_cast %48 : vector<16x256xf32> to vector<1x16x256xf32>
    %c0_31 = arith.constant 0 : index
    %c0_32 = arith.constant 0 : index
    %c0_33 = arith.constant 0 : index
    %50 = vector.load %arg11[%c0_31, %c0_32, %c0_33] : memref<1x16x256xf32, #tpu.memory_space<vmem>>, vector<1x16x256xf32>
    tpu.vector_store %arg11[%c0_31, %c0_32, %c0_33], %49 {strides = array<i32>} : memref<1x16x256xf32, #tpu.memory_space<vmem>>, vector<1x16x256xf32>,
    return
  }
  func.func @transform_0(%arg0: i32) -> (i32, i32, i32) {
    %c0_i32 = arith.constant 0 : i32
    %c0_i32_0 = arith.constant 0 : i32
    %c0_i32_1 = arith.constant 0 : i32
    return %arg0, %c0_i32, %c0_i32_0 : i32, i32, i32
  }
  func.func @transform_1(%arg0: i32) -> (i32, i32) {
    %c0_i32 = arith.constant 0 : i32
    %c0_i32_0 = arith.constant 0 : i32
    %c0_i32_1 = arith.constant 0 : i32
    return %c0_i32, %c0_i32_0 : i32, i32
  }
  func.func @transform_2(%arg0: i32) -> (i32, i32) {
    %c0_i32 = arith.constant 0 : i32
    %c0_i32_0 = arith.constant 0 : i32
    %c0_i32_1 = arith.constant 0 : i32
    return %c0_i32, %c0_i32_0 : i32, i32
  }
  func.func @transform_3(%arg0: i32) -> (i32, i32) {
    %c0_i32 = arith.constant 0 : i32
    %c0_i32_0 = arith.constant 0 : i32
    %c0_i32_1 = arith.constant 0 : i32
    return %c0_i32, %c0_i32_0 : i32, i32
  }
  func.func @transform_4(%arg0: i32) -> (i32, i32) {
    %c0_i32 = arith.constant 0 : i32
    %c0_i32_0 = arith.constant 0 : i32
    %c0_i32_1 = arith.constant 0 : i32
    return %c0_i32, %c0_i32_0 : i32, i32
  }
  func.func @transform_5(%arg0: i32) -> (i32, i32) {
    %c0_i32 = arith.constant 0 : i32
    %c0_i32_0 = arith.constant 0 : i32
    %c0_i32_1 = arith.constant 0 : i32
    return %c0_i32, %c0_i32_0 : i32, i32
  }
  func.func @transform_6(%arg0: i32) -> (i32, i32) {
    %c0_i32 = arith.constant 0 : i32
    %c0_i32_0 = arith.constant 0 : i32
    %c0_i32_1 = arith.constant 0 : i32
    return %c0_i32, %c0_i32_0 : i32, i32
  }
  func.func @transform_7(%arg0: i32) -> (i32, i32) {
    %c0_i32 = arith.constant 0 : i32
    %c0_i32_0 = arith.constant 0 : i32
    %c0_i32_1 = arith.constant 0 : i32
    return %c0_i32, %c0_i32_0 : i32, i32
  }
  func.func @transform_8(%arg0: i32) -> (i32, i32) {
    %c0_i32 = arith.constant 0 : i32
    %c0_i32_0 = arith.constant 0 : i32
    %c0_i32_1 = arith.constant 0 : i32
    return %c0_i32, %c0_i32_0 : i32, i32
  }
  func.func @transform_9(%arg0: i32) -> (i32, i32) {
    %c0_i32 = arith.constant 0 : i32
    %c0_i32_0 = arith.constant 0 : i32
    %c0_i32_1 = arith.constant 0 : i32
    return %c0_i32, %c0_i32_0 : i32, i32
  }
  func.func @transform_10(%arg0: i32) -> (i32, i32, i32) {
    %c0_i32 = arith.constant 0 : i32
    %c0_i32_0 = arith.constant 0 : i32
    %c0_i32_1 = arith.constant 0 : i32
    return %arg0, %c0_i32, %c0_i32_0 : i32, i32, i32
  }
}

</mosaic_0001>

<bundles_post_ra>
// kernel: tile.28
= control target key start
LH: loop header
LB: loop body
LE: loop exit
PB: predicated region body
PF: predicated region fallthrough
CT: control target
= control target key end

     0   :  { %s28_s0 = inlined_call_operand.vmem [shape: f32[16], index: 0, kind: input, shape index: {}]   ;;  %s29_s1 = inlined_call_operand.vmem [shape: f32[16,16], index: 1, kind: output, shape index: {}]  }
   0x1   :  { %v4_v0 = vld [vmem:[%s28_s0] ss:$0 sm:$0xff] }
   0x2   :  { %5 = vst [vmem:[%s29_s1] sm:$0xff] %v4_v0  ;;  %8 = vst [vmem:[%s29_s1 + $0x8] sm:$0xff] %v4_v0 }

// kernel: tile.29
= control target key start
LH: loop header
LB: loop body
LE: loop exit
PB: predicated region body
PF: predicated region fallthrough
CT: control target
= control target key end

     0   :  { %s7_s6 = smov 3  ;;  %s21_s9 = smov 3  ;;  %vm4_vm0 = vcmask 130048   ;;  %vm11_vm1 = vcmask 1048448   ;;  %vm18_vm2 = vcmask 917248   ;;  %vm25_vm3 = vcmask 786048   ;;  %s128_s0 = inlined_call_operand.vmem [shape: f32[16,16], index: 0, kind: input, shape index: {}]   ;;  %s129_s1 = inlined_call_operand.vmem [shape: f32[1,256], index: 1, kind: output, shape index: {}]  }
   0x1   :  { %v66_v0 = vld [vmem:[%s128_s0 + $0x7] ss:$8 sm:%s7_s6]   ;;  %s81_s10 = smov 112   ;;  %v68_v1 = vld [vmem:[%s128_s0 + $0x5] ss:$8 sm:%s21_s9]   ;;  %s14_s13 = smov 3 }
   0x2   :  { %9 = vrot.lane.b32.xlu0 %v66_v0, %s81_s10  ;;  %s82_s14 = smov 80   ;;  %v67_v2 = vld [vmem:[%s128_s0 + $0x6] ss:$8 sm:%s14_s13]   ;;  %s28_s17 = smov 3  ;;  %vm32_vm4 = vcmask 654848   ;;  %vm39_vm5 = vcmask 523648  }
   0x3   :  { %23 = vrot.lane.b32.xlu1 %v68_v1, %s82_s14  ;;  %v69_v3 = vld [vmem:[%s128_s0 + $0x4] ss:$8 sm:%s28_s17]   ;;  %s35_s20 = smov 3  ;;  %s42_s21 = smov 3  ;;  %vm46_vm6 = vcmask 392448   ;;  %vm53_vm7 = vcmask 261248  }
   0x4   :  { %s83_s22 = smov 96   ;;  %s84_s23 = smov 64   ;;  %v70_v4 = vld [vmem:[%s128_s0 + $0x3] ss:$8 sm:%s35_s20]   ;;  %v71_v5 = vld [vmem:[%s128_s0 + $0x2] ss:$8 sm:%s42_s21]  }
   0x5   :  { %s2_s26 = smov 3  ;;  %s49_s29 = smov 3 }
   0x6   :  { %16 = vrot.lane.b32.xlu0 %v67_v2, %s83_s22  ;;  %v3_v6 = vld [vmem:[%s128_s0] ss:$8 sm:%s2_s26]   ;;  %s85_s3 = smov 48   ;;  %s86_s4 = smov 32  }
   0x7   :  { %30 = vrot.lane.b32.xlu1 %v69_v3, %s84_s23  ;;  %5 = vst.msk [vmem:[#allocation0] ss:$8 sm:$0x3] %vm4_vm0, %v3_v6   ;;  %v72_v7 = vld [vmem:[%s128_s0 + $0x1] ss:$8 sm:%s49_s29]   ;;  %s87_s0 = smov 16  }
   0xa   :  { %37 = vrot.lane.b32.xlu0 %v70_v4, %s85_s3 }
   0xb   :  { %44 = vrot.lane.b32.xlu1 %v71_v5, %s86_s4 }
   0xe   :  { %51 = vrot.lane.b32.xlu0 %v72_v7, %s87_s0 }
  0x74   :  { %v10_v8 = vpop.permute.xlu0 %9  }
  0x75   :  { %12 = vst.msk [vmem:[#allocation0] ss:$8 sm:$0x3] %vm11_vm1, %v10_v8   ;;  %v24_v9 = vpop.permute.xlu1 %23  }
  0x78   :  { %v17_v10 = vpop.permute.xlu0 %16  }
  0x79   :  { %19 = vst.msk [vmem:[#allocation0] ss:$8 sm:$0x3] %vm18_vm2, %v17_v10   ;;  %v31_v11 = vpop.permute.xlu1 %30  }
  0x7a   :  { %26 = vst.msk [vmem:[#allocation0] ss:$8 sm:$0x3] %vm25_vm3, %v24_v9  }
  0x7b   :  { %33 = vst.msk [vmem:[#allocation0] ss:$8 sm:$0x3] %vm32_vm4, %v31_v11  }
  0x7c   :  { %v38_v12 = vpop.permute.xlu0 %37  }
  0x7d   :  { %40 = vst.msk [vmem:[#allocation0] ss:$8 sm:$0x3] %vm39_vm5, %v38_v12   ;;  %v45_v13 = vpop.permute.xlu1 %44  }
  0x7e   :  { %47 = vst.msk [vmem:[#allocation0] ss:$8 sm:$0x3] %vm46_vm6, %v45_v13  }
  0x80   :  { %v52_v14 = vpop.permute.xlu0 %51  }
  0x81   :  { %54 = vst.msk [vmem:[#allocation0] ss:$8 sm:$0x3] %vm53_vm7, %v52_v14  }
  0x88   :  { %v58_v15 = vld [vmem:[#allocation0] sm:$0x1]  ;;  %v62_v16 = vld [vmem:[#allocation0 + $0x8] sm:$0x1] }
  0x89   :  { %60 = vst [vmem:[%s129_s1] sm:$0x1] %v58_v15  ;;  %73 = vst [vmem:[%s129_s1 + $0x1] sm:$0x1] %v62_v16 }

// kernel: tile.18
= control target key start
LH: loop header
LB: loop body
LE: loop exit
PB: predicated region body
PF: predicated region fallthrough
CT: control target
= control target key end

     0   :  { %s28_s0 = inlined_call_operand.vmem [shape: f32[8], index: 0, kind: input, shape index: {}]   ;;  %s29_s1 = inlined_call_operand.vmem [shape: f32[16,8], index: 1, kind: output, shape index: {}]  }
   0x1   :  { %v4_v0 = vld [vmem:[%s28_s0] ss:$0 sm:$0xff] }
   0x2   :  { %5 = vst [vmem:[%s29_s1] sm:$0xff] %v4_v0  ;;  %8 = vst [vmem:[%s29_s1 + $0x8] sm:$0xff] %v4_v0 }

// kernel: tile.19
= control target key start
LH: loop header
LB: loop body
LE: loop exit
PB: predicated region body
PF: predicated region fallthrough
CT: control target
= control target key end

     0   :  { %s131_s10 = smov 120   ;;  %s132_s11 = smov 104   ;;  %vm3_vm0 = vcmask 64512   ;;  %vm9_vm1 = vcmask 1048512   ;;  %vm15_vm2 = vcmask 982912   ;;  %vm21_vm3 = vcmask 917312   ;;  %s207_s0 = inlined_call_operand.vmem [shape: f32[16,8], index: 0, kind: input, shape index: {}]   ;;  %s208_s1 = inlined_call_operand.vmem [shape: f32[1,128], index: 1, kind: output, shape index: {}]  }
   0x1   :  { %v101_v0 = vld [vmem:[%s207_s0 + $0xf] sm:$0x1]   ;;  %v103_v1 = vld [vmem:[%s207_s0 + $0xd] sm:$0x1]   ;;  %v102_v2 = vld [vmem:[%s207_s0 + $0xe] sm:$0x1]  }
   0x2   :  { %7 = vrot.lane.b32.xlu0 %v101_v0, %s131_s10  ;;  %19 = vrot.lane.b32.xlu1 %v103_v1, %s132_s11  ;;  %v104_v3 = vld [vmem:[%s207_s0 + $0xc] sm:$0x1]   ;;  %s133_s16 = smov 112   ;;  %s134_s17 = smov 96   ;;  %v105_v4 = vld [vmem:[%s207_s0 + $0xb] sm:$0x1]  }
   0x3   :  { %v106_v5 = vld [vmem:[%s207_s0 + $0xa] sm:$0x1]   ;;  %v2_v6 = vld [vmem:[%s207_s0] sm:$0x1]   ;;  %s135_s24 = smov 88   ;;  %s136_s25 = smov 80  }
   0x4   :  { %4 = vst.msk [vmem:[#allocation0] sm:$0x1] %vm3_vm0, %v2_v6   ;;  %v107_v7 = vld [vmem:[%s207_s0 + $0x9] sm:$0x1]   ;;  %v108_v8 = vld [vmem:[%s207_s0 + $0x8] sm:$0x1]  }
   0x5   :  { %s137_s30 = smov 72   ;;  %s138_s2 = smov 64   ;;  %v109_v9 = vld [vmem:[%s207_s0 + $0x7] sm:$0x1]   ;;  %v110_v10 = vld [vmem:[%s207_s0 + $0x6] sm:$0x1]  }
   0x6   :  { %13 = vrot.lane.b32.xlu0 %v102_v2, %s133_s16  ;;  %25 = vrot.lane.b32.xlu1 %v104_v3, %s134_s17  ;;  %s139_s7 = smov 56   ;;  %s140_s8 = smov 48   ;;  %v111_v11 = vld [vmem:[%s207_s0 + $0x5] sm:$0x1]   ;;  %v112_v12 = vld [vmem:[%s207_s0 + $0x4] sm:$0x1]  }
   0x7   :  { %s141_s13 = smov 40   ;;  %s142_s14 = smov 32   ;;  %v113_v13 = vld [vmem:[%s207_s0 + $0x3] sm:$0x1]   ;;  %v114_v14 = vld [vmem:[%s207_s0 + $0x2] sm:$0x1]  }
   0x8   :  { %s143_s19 = smov 24   ;;  %s144_s20 = smov 16   ;;  %v115_v15 = vld [vmem:[%s207_s0 + $0x1] sm:$0x1]   ;;  %vm27_vm4 = vcmask 851712   ;;  %vm33_vm5 = vcmask 786112  }
   0x9   :  { %s145_s0 = smov 8   ;;  %vm39_vm6 = vcmask 720512   ;;  %vm45_vm7 = vcmask 654912   ;;  %vm51_vm8 = vcmask 589312   ;;  %vm57_vm9 = vcmask 523712  }
   0xa   :  { %31 = vrot.lane.b32.xlu0 %v105_v4, %s135_s24  ;;  %37 = vrot.lane.b32.xlu1 %v106_v5, %s136_s25  ;;  %vm63_vm10 = vcmask 458112   ;;  %vm69_vm11 = vcmask 392512   ;;  %vm75_vm12 = vcmask 326912   ;;  %vm81_vm13 = vcmask 261312  }
   0xb   :  { %vm87_vm14 = vcmask 195712   ;;  %vm93_vm15 = vcmask 130112  }
   0xe   :  { %43 = vrot.lane.b32.xlu0 %v107_v7, %s137_s30  ;;  %49 = vrot.lane.b32.xlu1 %v108_v8, %s138_s2 }
  0x12   :  { %55 = vrot.lane.b32.xlu0 %v109_v9, %s139_s7  ;;  %61 = vrot.lane.b32.xlu1 %v110_v10, %s140_s8 }
  0x16   :  { %67 = vrot.lane.b32.xlu0 %v111_v11, %s141_s13  ;;  %73 = vrot.lane.b32.xlu1 %v112_v12, %s142_s14 }
  0x1a   :  { %79 = vrot.lane.b32.xlu0 %v113_v13, %s143_s19  ;;  %85 = vrot.lane.b32.xlu1 %v114_v14, %s144_s20 }
  0x1e   :  { %91 = vrot.lane.b32.xlu0 %v115_v15, %s145_s0 }
  0x74   :  { %v8_v16 = vpop.permute.xlu0 %7   ;;  %v20_v17 = vpop.permute.xlu1 %19  }
  0x75   :  { %10 = vst.msk [vmem:[#allocation0] sm:$0x1] %vm9_vm1, %v8_v16  }
  0x78   :  { %v14_v18 = vpop.permute.xlu0 %13   ;;  %v26_v19 = vpop.permute.xlu1 %25  }
  0x79   :  { %16 = vst.msk [vmem:[#allocation0] sm:$0x1] %vm15_vm2, %v14_v18  }
  0x7a   :  { %22 = vst.msk [vmem:[#allocation0] sm:$0x1] %vm21_vm3, %v20_v17  }
  0x7b   :  { %28 = vst.msk [vmem:[#allocation0] sm:$0x1] %vm27_vm4, %v26_v19  }
  0x7c   :  { %v32_v20 = vpop.permute.xlu0 %31   ;;  %v38_v21 = vpop.permute.xlu1 %37  }
  0x7d   :  { %34 = vst.msk [vmem:[#allocation0] sm:$0x1] %vm33_vm5, %v32_v20  }
  0x7e   :  { %40 = vst.msk [vmem:[#allocation0] sm:$0x1] %vm39_vm6, %v38_v21  }
  0x80   :  { %v44_v22 = vpop.permute.xlu0 %43   ;;  %v50_v23 = vpop.permute.xlu1 %49  }
  0x81   :  { %46 = vst.msk [vmem:[#allocation0] sm:$0x1] %vm45_vm7, %v44_v22  }
  0x82   :  { %52 = vst.msk [vmem:[#allocation0] sm:$0x1] %vm51_vm8, %v50_v23  }
  0x84   :  { %v56_v24 = vpop.permute.xlu0 %55   ;;  %v62_v25 = vpop.permute.xlu1 %61  }
  0x85   :  { %58 = vst.msk [vmem:[#allocation0] sm:$0x1] %vm57_vm9, %v56_v24  }
  0x86   :  { %64 = vst.msk [vmem:[#allocation0] sm:$0x1] %vm63_vm10, %v62_v25  }
  0x88   :  { %v68_v26 = vpop.permute.xlu0 %67   ;;  %v74_v27 = vpop.permute.xlu1 %73  }
  0x89   :  { %70 = vst.msk [vmem:[#allocation0] sm:$0x1] %vm69_vm11, %v68_v26  }
  0x8a   :  { %76 = vst.msk [vmem:[#allocation0] sm:$0x1] %vm75_vm12, %v74_v27  }
  0x8c   :  { %v80_v28 = vpop.permute.xlu0 %79   ;;  %v86_v29 = vpop.permute.xlu1 %85  }
  0x8d   :  { %82 = vst.msk [vmem:[#allocation0] sm:$0x1] %vm81_vm13, %v80_v28  }
  0x8e   :  { %88 = vst.msk [vmem:[#allocation0] sm:$0x1] %vm87_vm14, %v86_v29  }
  0x90   :  { %v92_v30 = vpop.permute.xlu0 %91  }
  0x91   :  { %94 = vst.msk [vmem:[#allocation0] sm:$0x1] %vm93_vm15, %v92_v30  }
  0x98   :  { %v98_v31 = vld [vmem:[#allocation0] sm:$0x1] }
  0x99   :  { %100 = vst [vmem:[%s208_s1] sm:$0x1] %v98_v31 }

// kernel: sirmlp_forward.1
= control target key start
LH: loop header
LB: loop body
LE: loop exit
PB: predicated region body
PF: predicated region fallthrough
CT: control target
= control target key end

     0   :  { %s1912_s13 = smov 0   ;;  %s2885_s0 = inlined_call_operand.vmem [shape: f32[2,24,90], index: 0, kind: input, shape index: {}]   ;;  %s2886_s1 = inlined_call_operand.vmem [shape: f32[90,144], index: 1, kind: input, shape index: {}]   ;;  %s2887_s2 = inlined_call_operand.vmem [shape: f32[144,128], index: 2, kind: input, shape index: {}]   ;;  %s2888_s3 = inlined_call_operand.vmem [shape: f32[144,256], index: 3, kind: input, shape index: {}]   ;;  %s2889_s4 = inlined_call_operand.vmem [shape: f32[144,128], index: 4, kind: input, shape index: {}]   ;;  %s2890_s5 = inlined_call_operand.vmem [shape: f32[1,128], index: 5, kind: input, shape index: {}]   ;;  %s2891_s6 = inlined_call_operand.vmem [shape: f32[1,128], index: 6, kind: input, shape index: {}]   ;;  %s2892_s7 = inlined_call_operand.vmem [shape: f32[128,512], index: 7, kind: input, shape index: {}]   ;;  %s2893_s8 = inlined_call_operand.vmem [shape: f32[512,256], index: 8, kind: input, shape index: {}]   ;;  %s2894_s9 = inlined_call_operand.vmem [shape: f32[1,256], index: 9, kind: input, shape index: {}]   ;;  %s2895_s10 = inlined_call_operand.vmem [shape: f32[2,16,256], index: 10, kind: output, shape index: {}]  }
   0x1 LB: > { %s1474_s14 = sadd.s32 4294967295, %s1852_s13   ;;  %p1478_p0 = scmp.ge.s32.totalorder %s1852_s13, 1  ;;  %s1852_s13 = sphi %s1912_s13, %s20_s13  }
   0x2   : > { %p312_p1 = scmp.lt.s32.totalorder %s1852_s13, 3 }
   0x4   : > { %p313_p2 = pnand %p1478_p0, %p312_p1 }
   0x5   : > { %v364_v0 = vld [vmem:[%s2886_s1 + $0x8] sm:$0xff] (!%p313_p2)  ;;  %v366_v1 = vld [vmem:[%s2886_s1 + $0x18] sm:$0xff] (!%p313_p2)  ;;  %v363_v2 = vld [vmem:[%s2886_s1] sm:$0xff] (!%p313_p2)  ;;  %v1854_v7 = vmov (!%p313_p2), 0.0   ;;  %p1977_p3 = scmp.lt.s32.totalorder (!%p313_p2), %s1474_s14, 1  ;;  %vm397_vm0 = vcmask (!%p313_p2), 1041408  }
   0x6   : > { %316 = sbr.rel (%p313_p2) target bundleno = 973 (0x3cd), region = 60  ;;  %v1498_v3 = vpack.c.bf16 (!%p313_p2), %v366_v1, %v364_v0  ;;  %v365_v4 = vld [vmem:[%s2886_s1 + $0x10] sm:$0xff] (!%p313_p2)  ;;  %v368_v5 = vld [vmem:[%s2886_s1 + $0x28] sm:$0xff] (!%p313_p2)  ;;  %v370_v6 = vld [vmem:[%s2886_s1 + $0x38] sm:$0xff] (!%p313_p2)  ;;  %468 = vmatprep.mubr.f32.mxu0 (!%p313_p2), %v1854_v7  ;;  %vm1855_vm1 = vmmov (!%p313_p2), 1   ;;  %vm387_vm3 = vcmask (!%p313_p2), 736256  }
   0x7   : > { %v1500_v8 = vpack.c.bf16 (!%p313_p2), %v365_v4, %v363_v2  ;;  %v1502_v9 = vpack.c.bf16 (!%p313_p2), %v370_v6, %v368_v5  ;;  %v367_v10 = vld [vmem:[%s2886_s1 + $0x20] sm:$0xff] (!%p313_p2)  ;;  %v369_v11 = vld [vmem:[%s2886_s1 + $0x30] sm:$0xff] (!%p313_p2)  ;;  %v372_v12 = vld [vmem:[%s2886_s1 + $0x48] sm:$0xff] (!%p313_p2)  ;;  %vm547_vm4 = vcmask (!%p313_p2), 130048  }
   0x8   : > { %1499 = vmatprep.subr.bf16.mxu0 (!%p313_p2), %v1498_v3  ;;  %v374_v13 = vld [vmem:[%s2886_s1 + $0x58] sm:$0xff] (!%p313_p2)  ;;  %v1504_v14 = vpack.c.bf16 (!%p313_p2), %v369_v11, %v367_v10  ;;  %v371_v16 = vld [vmem:[%s2886_s1 + $0x40] sm:$0xff] (!%p313_p2)  ;;  %v373_v17 = vld [vmem:[%s2886_s1 + $0x50] sm:$0xff] (!%p313_p2)  ;;  %v1856_v10 = vmov (!%p313_p2), 0.0|0.0  }
   0x9   : > { %1501 = vmatpush1.bf16.msra.mxu0 (!%p313_p2), %v1500_v8  ;;  %v1506_v15 = vpack.c.bf16 (!%p313_p2), %v374_v13, %v372_v12  ;;  %v376_v18 = vld [vmem:[%s2886_s1 + $0x68] sm:$0xff] (!%p313_p2)  ;;  %v378_v19 = vld [vmem:[%s2886_s1 + $0x78] sm:$0xff] (!%p313_p2)  ;;  %v1508_v20 = vpack.c.bf16 (!%p313_p2), %v373_v17, %v371_v16  ;;  %v375_v21 = vld [vmem:[%s2886_s1 + $0x60] sm:$0xff] (!%p313_p2) }
   0xa   : > { %1503 = vmatprep.subr.bf16.mxu0 (!%p313_p2), %v1502_v9  ;;  %v377_v22 = vld [vmem:[%s2886_s1 + $0x70] sm:$0xff] (!%p313_p2)  ;;  %v380_v23 = vld [vmem:[%s2886_s1 + $0x88] sm:$0xff] (!%p313_p2)  ;;  %v1510_v24 = vpack.c.bf16 (!%p313_p2), %v378_v19, %v376_v18  ;;  %v382_v25 = vld [vmem:[%s2886_s1 + $0x98] sm:$0xff] (!%p313_p2) }
   0xb   : > { %v512_v26 = vld [vmem:[%s2888_s3 + $0x8] sm:$0xff] (!%p313_p2)  ;;  %v514_v27 = vld [vmem:[%s2888_s3 + $0x18] sm:$0xff] (!%p313_p2)  ;;  %v511_v29 = vld [vmem:[%s2888_s3] sm:$0xff] (!%p313_p2)  ;;  %v1512_v36 = vpack.c.bf16 (!%p313_p2), %v377_v22, %v375_v21  ;;  %v1514_v40 = vpack.c.bf16 (!%p313_p2), %v382_v25, %v380_v23 }
   0xc   : > { %v1524_v28 = vpack.c.bf16 (!%p313_p2), %v514_v27, %v512_v26  ;;  %v513_v30 = vld [vmem:[%s2888_s3 + $0x10] sm:$0xff] (!%p313_p2)  ;;  %v516_v31 = vld [vmem:[%s2888_s3 + $0x28] sm:$0xff] (!%p313_p2)  ;;  %v518_v33 = vld [vmem:[%s2888_s3 + $0x38] sm:$0xff] (!%p313_p2) }
   0xd   : > { %1505 = vmatpush1.bf16.msra.mxu0 %v1504_v14  ;;  %v1526_v32 = vpack.c.bf16 %v513_v30, %v511_v29  ;;  %v515_v34 = vld [vmem:[%s2888_s3 + $0x20] sm:$0xff]  ;;  %v517_v35 = vld [vmem:[%s2888_s3 + $0x30] sm:$0xff]  ;;  %v1528_v37 = vpack.c.bf16 %v518_v33, %v516_v31  ;;  %v520_v38 = vld [vmem:[%s2888_s3 + $0x48] sm:$0xff]  ;;  %s2900_s14 = smov (!%p1977_p3, %s1474_s14), 1 }
   0xe   : > { %1507 = vmatprep.subr.bf16.mxu0 %v1506_v15  ;;  %1525 = vmatprep.subr.bf16.mxu1 %v1524_v28  ;;  %v522_v39 = vld [vmem:[%s2888_s3 + $0x58] sm:$0xff]  ;;  %v379_v41 = vld [vmem:[%s2886_s1 + $0x80] sm:$0xff]  ;;  %v381_v42 = vld [vmem:[%s2886_s1 + $0x90] sm:$0xff]  ;;  %v1530_v44 = vpack.c.bf16 %v517_v35, %v515_v34  ;;  %s1814_s21 = smul.u32 24, %s2900_s14  ;;  %s1497_s28 = sshll.u32 %s2900_s14, 5 }
   0xf   : > { %v384_v43 = vld [vmem:[%s2886_s1 + $0xa8] sm:$0xff]  ;;  %1527 = vmatpush1.bf16.msra.mxu1 %v1526_v32  ;;  %v386_v45 = vld [vmem:[%s2886_s1 + $0xb8] sm:$0x3]  ;;  %v1532_v46 = vpack.c.bf16 %v522_v39, %v520_v38  ;;  %v519_v47 = vld [vmem:[%s2888_s3 + $0x40] sm:$0xff]  ;;  %v1516_v51 = vpack.c.bf16 %v381_v42, %v379_v41  ;;  %s359_s15 = scalar_lea.vmem %s2895_s10, %s1497_s28 }
  0x10   : > { %1529 = vmatprep.subr.bf16.mxu1 %v1528_v37  ;;  %v521_v48 = vld [vmem:[%s2888_s3 + $0x50] sm:$0xff]  ;;  %v524_v49 = vld [vmem:[%s2888_s3 + $0x68] sm:$0xff]  ;;  %v526_v50 = vld [vmem:[%s2888_s3 + $0x78] sm:$0xff]  ;;  %v1518_v52 = vpack.c.bf16 %v386_v45, %v384_v43  ;;  %s2069_s11 = scalar_lea.vmem %s2885_s0, %s1814_s21 }
  0x11   : > { %1509 = vmatpush1.bf16.msra.mxu0 %v1508_v20  ;;  %v383_v53 = vld [vmem:[%s2886_s1 + $0xa0] sm:$0xff]  ;;  %v385_v54 = vld [vmem:[%s2886_s1 + $0xb0] sm:$0x3]  ;;  %v1534_v55 = vpack.c.bf16 %v521_v48, %v519_v47  ;;  %vm2048_vm2 = vmpackc.low %vm397_vm0, %vm1855_vm1  ;;  %v1536_v57 = vpack.c.bf16 %v526_v50, %v524_v49 }
  0x12   : > { %1511 = vmatprep.subr.bf16.mxu0 %v1510_v24  ;;  %v523_v58 = vld [vmem:[%s2888_s3 + $0x60] sm:$0xff]  ;;  %v525_v59 = vld [vmem:[%s2888_s3 + $0x70] sm:$0xff]  ;;  %v528_v60 = vld [vmem:[%s2888_s3 + $0x88] sm:$0xff]  ;;  %v1521_v62 = vpack.c.bf16 %v385_v54, %v383_v53 }
  0x13   : > { %1531 = vmatpush1.bf16.msra.mxu1 %v1530_v44  ;;  %v530_v61 = vld [vmem:[%s2888_s3 + $0x98] sm:$0xff]  ;;  %v1538_v63 = vpack.c.bf16 %v525_v59, %v523_v58  ;;  %v631_v0 = vld [vmem:[%s2887_s2] sm:$0xff]  ;;  %v632_v1 = vld [vmem:[%s2887_s2 + $0x8] sm:$0xff] }
  0x14   : > { %1533 = vmatprep.subr.bf16.mxu1 %v1532_v46  ;;  %v1540_v2 = vpack.c.bf16 %v530_v61, %v528_v60  ;;  %v527_v3 = vld [vmem:[%s2888_s3 + $0x80] sm:$0xff]  ;;  %v529_v4 = vld [vmem:[%s2888_s3 + $0x90] sm:$0xff]  ;;  %v532_v5 = vld [vmem:[%s2888_s3 + $0xa8] sm:$0xff]  ;;  %v1561_v9 = vpack.c.bf16 %v632_v1, %v631_v0  ;;  %v493_v60 = vlaneseq }
  0x15   : > { %1513 = vmatpush1.bf16.msra.mxu0 %v1512_v36  ;;  %v534_v6 = vld [vmem:[%s2888_s3 + $0xb8] sm:$0xff]  ;;  %v360_v8 = vld [vmem:[%s2069_s11] sm:$0xff]  ;;  %v1542_v11 = vpack.c.bf16 %v529_v4, %v527_v3  ;;  %v633_v12 = vld [vmem:[%s2887_s2 + $0x10] sm:$0xff] }
  0x16   : > { %1515 = vmatprep.subr.bf16.mxu0 %v1514_v40  ;;  %v634_v13 = vld [vmem:[%s2887_s2 + $0x18] sm:$0xff]  ;;  %v1544_v14 = vpack.c.bf16 %v534_v6, %v532_v5  ;;  %v531_v15 = vld [vmem:[%s2888_s3 + $0xa0] sm:$0xff]  ;;  %v533_v16 = vld [vmem:[%s2888_s3 + $0xb0] sm:$0xff]  ;;  %v2205_v1 = vshrl.u32 %v493_v60, 7 }
  0x17   : > { %1535 = vmatpush1.bf16.msra.mxu1 %v1534_v55  ;;  %v536_v17 = vld [vmem:[%s2888_s3 + $0xc8] sm:$0xff]  ;;  %v538_v18 = vld [vmem:[%s2888_s3 + $0xd8] sm:$0xff]  ;;  %v1564_v20 = vpack.c.bf16 %v634_v13, %v633_v12  ;;  %v1546_v21 = vpack.c.bf16 %v533_v16, %v531_v15  ;;  %v635_v22 = vld [vmem:[%s2887_s2 + $0x20] sm:$0xff] }
  0x18   : > { %1537 = vmatprep.subr.bf16.mxu1 %v1536_v57  ;;  %v361_v19 = vld [vmem:[%s2069_s11 + $0x8] sm:$0xff]  ;;  %v1548_v24 = vpack.c.bf16 %v538_v18, %v536_v17  ;;  %v535_v25 = vld [vmem:[%s2888_s3 + $0xc0] sm:$0xff]  ;;  %v537_v26 = vld [vmem:[%s2888_s3 + $0xd0] sm:$0xff]  ;;  %vm506_vm5 = vcmp.lt.s32.totalorder %v2205_v1, 7  ;;  %vm495_vm6 = vcmp.lt.s32.totalorder %v2205_v1, 1 }
  0x19   : > { %1517 = vmatpush1.bf16.msra.mxu0 %v1516_v51  ;;  %v636_v23 = vld [vmem:[%s2887_s2 + $0x28] sm:$0xff]  ;;  %v542_v28 = vld [vmem:[%s2888_s3 + $0xf8] sm:$0xff]  ;;  %v362_v29 = vld [vmem:[%s2069_s11 + $0x10] sm:$0xff]  ;;  %v1550_v31 = vpack.c.bf16 %v537_v26, %v535_v25 }
  0x1a   : > { %1520 = vmatprep.subr.msk.bf16.mxu0 %vm2048_vm2, %v1518_v52  ;;  %v540_v27 = vld [vmem:[%s2888_s3 + $0xe8] sm:$0xff]  ;;  %v1567_v30 = vpack.c.bf16 %v636_v23, %v635_v22  ;;  %v637_v32 = vld [vmem:[%s2887_s2 + $0x30] sm:$0xff]  ;;  %v638_v33 = vld [vmem:[%s2887_s2 + $0x38] sm:$0xff] }
  0x1b   : > { %1539 = vmatpush1.bf16.msra.mxu1 %v1538_v63  ;;  %v1552_v34 = vpack.c.bf16 %v542_v28, %v540_v27  ;;  %v539_v35 = vld [vmem:[%s2888_s3 + $0xe0] sm:$0xff]  ;;  %v541_v36 = vld [vmem:[%s2888_s3 + $0xf0] sm:$0xff]  ;;  %v544_v37 = vld [vmem:[%s2888_s3 + $0x108] sm:$0xff]  ;;  %v1570_v39 = vpack.c.bf16 %v638_v33, %v637_v32 }
  0x1c   : > { %1541 = vmatprep.subr.bf16.mxu1 %v1540_v2  ;;  %v546_v38 = vld [vmem:[%s2888_s3 + $0x118] sm:$0xff]  ;;  %v1554_v40 = vpack.c.bf16 %v541_v36, %v539_v35  ;;  %v639_v41 = vld [vmem:[%s2887_s2 + $0x40] sm:$0xff]  ;;  %v640_v42 = vld [vmem:[%s2887_s2 + $0x48] sm:$0xff] }
  0x1d   : > { %1523 = vmatpush1.bf16.msk.msra.mxu0 %vm2048_vm2, %v1521_v62  ;;  %v1556_v43 = vpack.c.bf16 %v546_v38, %v544_v37  ;;  %v543_v44 = vld [vmem:[%s2888_s3 + $0x100] sm:$0xff]  ;;  %v545_v45 = vld [vmem:[%s2888_s3 + $0x110] sm:$0xff]  ;;  %v1573_v46 = vpack.c.bf16 %v640_v42, %v639_v41  ;;  %v642_v49 = vld [vmem:[%s2887_s2 + $0x58] sm:$0xff] }
  0x1e   : > { %1560 = vmatprep.subr.bf16.mxu0 %v1856_v10  ;;  %v1558_v47 = vpack.c.bf16 %v545_v45, %v543_v44  ;;  %v641_v48 = vld [vmem:[%s2887_s2 + $0x50] sm:$0xff]  ;;  %v643_v51 = vld [vmem:[%s2887_s2 + $0x60] sm:$0xff]  ;;  %v644_v52 = vld [vmem:[%s2887_s2 + $0x68] sm:$0xff] }
  0x1f   : > { %1543 = vmatpush1.bf16.msra.mxu1 %v1542_v11  ;;  %v1576_v50 = vpack.c.bf16 %v642_v49, %v641_v48  ;;  %v1579_v53 = vpack.c.bf16 %v644_v52, %v643_v51  ;;  %v645_v54 = vld [vmem:[%s2887_s2 + $0x70] sm:$0xff]  ;;  %v646_v55 = vld [vmem:[%s2887_s2 + $0x78] sm:$0xff]  ;;  %v647_v57 = vld [vmem:[%s2887_s2 + $0x80] sm:$0xff] }
  0x20   : > { %1484 = vmatmul.mubr.msk.f32.vlgmr.msra.gmra.mrb[0].mxu0 %vm387_vm3, %v360_v8  ;;  %1545 = vmatprep.subr.bf16.mxu1 %v1544_v14  ;;  %v1582_v56 = vpack.c.bf16 %v646_v55, %v645_v54  ;;  %v648_v58 = vld [vmem:[%s2887_s2 + $0x88] sm:$0xff]  ;;  %v732_v61 = vld [vmem:[%s2889_s4] sm:$0xff]  ;;  %v734_v3 = vld [vmem:[%s2889_s4 + $0x10] sm:$0xff] }
  0x21   : > { %474 = vmatprep.mubr.f32.mxu0 %v1854_v7  ;;  %1562 = vmatpush1.bf16.msra.mxu0 %v1561_v9  ;;  %v1585_v59 = vpack.c.bf16 %v648_v58, %v647_v57  ;;  %v733_v62 = vld [vmem:[%s2889_s4 + $0x8] sm:$0xff]  ;;  %v735_v4 = vld [vmem:[%s2889_s4 + $0x18] sm:$0xff]  ;;  %v736_v8 = vld [vmem:[%s2889_s4 + $0x20] sm:$0xff] }
  0x22   : > { %1563 = vmatprep.subr.bf16.mxu0 %v1856_v10  ;;  %v1588_v0 = vpack.c.bf16 %v733_v62, %v732_v61  ;;  %v1591_v6 = vpack.c.bf16 %v735_v4, %v734_v3  ;;  %v737_v15 = vld [vmem:[%s2889_s4 + $0x28] sm:$0xff]  ;;  %v740_v38 = vld [vmem:[%s2889_s4 + $0x40] sm:$0xff]  ;;  %v742_v41 = vld [vmem:[%s2889_s4 + $0x50] sm:$0xff] }
  0x23   : > { %1547 = vmatpush1.bf16.msra.mxu1 %v1546_v21  ;;  %v743_v42 = vld [vmem:[%s2889_s4 + $0x58] sm:$0xff]  ;;  %v744_v44 = vld [vmem:[%s2889_s4 + $0x60] sm:$0xff]  ;;  %v745_v45 = vld [vmem:[%s2889_s4 + $0x68] sm:$0xff] }
  0x24   : > { %1485 = vmatmul.mubr.msk.f32.gmra.mrb[2].mxu0 %vm387_vm3, %v361_v19  ;;  %1549 = vmatprep.subr.bf16.mxu1 %v1548_v24  ;;  %v1594_v24 = vpack.c.bf16 %v737_v15, %v736_v8  ;;  %v747_v48 = vld [vmem:[%s2889_s4 + $0x78] sm:$0xff]  ;;  %v749_v51 = vld [vmem:[%s2889_s4 + $0x88] sm:$0xff]  ;;  %v863_v57 = vld [vmem:[%s2892_s7] sm:$0xff] }
  0x25   : > { %480 = vmatprep.mubr.f32.mxu0 %v1854_v7  ;;  %1565 = vmatpush1.bf16.msra.mxu0 %v1564_v20  ;;  %v868_v54 = vld [vmem:[%s2892_s7 + $0x28] sm:$0xff]  ;;  %v866_v55 = vld [vmem:[%s2892_s7 + $0x18] sm:$0xff]  ;;  %v867_v58 = vld [vmem:[%s2892_s7 + $0x20] sm:$0xff] }
  0x26   : > { %1566 = vmatprep.subr.bf16.mxu0 %v1856_v10  ;;  %v1616_v60 = vpack.c.bf16 %v867_v58, %v863_v57  ;;  %v865_v61 = vld [vmem:[%s2892_s7 + $0x10] sm:$0xff]  ;;  %v874_v3 = vld [vmem:[%s2892_s7 + $0x58] sm:$0xff]  ;;  %v871_v8 = vld [vmem:[%s2892_s7 + $0x40] sm:$0xff] }
  0x27   : > { %1551 = vmatpush1.bf16.msra.mxu1 %v1550_v31  ;;  %v869_v62 = vld [vmem:[%s2892_s7 + $0x30] sm:$0xff]  ;;  %v878_v4 = vld [vmem:[%s2892_s7 + $0x78] sm:$0xff]  ;;  %v880_v15 = vld [vmem:[%s2892_s7 + $0x88] sm:$0xff] }
  0x28   : > { %1486 = vmatmul.mubr.msk.f32.gmra.mrb[4].mxu0 %vm387_vm3, %v362_v29  ;;  %1553 = vmatprep.subr.bf16.mxu1 %v1552_v34  ;;  %v738_v29 = vld [vmem:[%s2889_s4 + $0x30] sm:$0xff] }
  0x29   : > { %1568 = vmatpush1.bf16.msra.mxu0 %v1567_v30  ;;  %v739_v30 = vld [vmem:[%s2889_s4 + $0x38] sm:$0xff] }
  0x2a   : > { %1569 = vmatprep.subr.bf16.mxu0 %v1856_v10  ;;  %v1597_v36 = vpack.c.bf16 %v739_v30, %v738_v29  ;;  %v890_v29 = vld [vmem:[%s2892_s7 + $0xd8] sm:$0xff] }
  0x2b   : > { %1555 = vmatpush1.bf16.msra.mxu1 %v1554_v40 }
  0x2c   : > { %1557 = vmatprep.subr.bf16.mxu1 %v1556_v43  ;;  %v1603_v43 = vpack.c.bf16 %v743_v42, %v742_v41  ;;  %v898_v41 = vld [vmem:[%s2892_s7 + $0x118] sm:$0xff] }
  0x2d   : > { %1571 = vmatpush1.bf16.msra.mxu0 %v1570_v39  ;;  %v741_v39 = vld [vmem:[%s2889_s4 + $0x48] sm:$0xff] }
  0x2e   : > { %1572 = vmatprep.subr.bf16.mxu0 %v1856_v10  ;;  %v1600_v40 = vpack.c.bf16 %v741_v39, %v740_v38  ;;  %v896_v39 = vld [vmem:[%s2892_s7 + $0x108] sm:$0xff] }
  0x2f   : > { %1559 = vmatpush1.bf16.msra.mxu1 %v1558_v47  ;;  %v746_v47 = vld [vmem:[%s2889_s4 + $0x70] sm:$0xff] }
  0x30   : > { %1587 = vmatprep.subr.bf16.mxu1 %v1856_v10  ;;  %v1609_v49 = vpack.c.bf16 %v747_v48, %v746_v47  ;;  %v897_v48 = vld [vmem:[%s2892_s7 + $0x110] sm:$0xff] }
  0x31   : > { %1574 = vmatpush1.bf16.msra.mxu0 %v1573_v46  ;;  %v1606_v46 = vpack.c.bf16 %v745_v45, %v744_v44  ;;  %v895_v44 = vld [vmem:[%s2892_s7 + $0x100] sm:$0xff] }
  0x32   : > { %1575 = vmatprep.subr.bf16.mxu0 %v1856_v10  ;;  %v899_v45 = vld [vmem:[%s2892_s7 + $0x120] sm:$0xff] }
  0x33   : > { %v1632_v47 = vpack.c.bf16 %v899_v45, %v895_v44 }
  0x35   : > { %1577 = vmatpush1.bf16.msra.mxu0 %v1576_v50  ;;  %v748_v50 = vld [vmem:[%s2889_s4 + $0x80] sm:$0xff] }
  0x36   : > { %1578 = vmatprep.subr.bf16.mxu0 %v1856_v10  ;;  %v1612_v52 = vpack.c.bf16 %v749_v51, %v748_v50  ;;  %v904_v51 = vld [vmem:[%s2892_s7 + $0x148] sm:$0xff] }
  0x39   : > { %1580 = vmatpush1.bf16.msra.mxu0 %v1579_v53  ;;  %v864_v53 = vld [vmem:[%s2892_s7 + $0x8] sm:$0xff] }
  0x3a   : > { %1581 = vmatprep.subr.bf16.mxu0 %v1856_v10 }
  0x3d   : > { %1583 = vmatpush1.bf16.msra.mxu0 %v1582_v56  ;;  %v870_v56 = vld [vmem:[%s2892_s7 + $0x38] sm:$0xff] }
  0x3e   : > { %1584 = vmatprep.subr.bf16.mxu0 %v1856_v10 }
  0x41   : > { %1586 = vmatpush1.bf16.msra.mxu0 %v1585_v59  ;;  %v1646_v59 = vpack.c.bf16 %v870_v56, %v866_v55  ;;  %v910_v55 = vld [vmem:[%s2892_s7 + $0x178] sm:$0xff]  ;;  %v907_v56 = vld [vmem:[%s2892_s7 + $0x160] sm:$0xff] }
  0xf3   : > { %v470_v63 = vpop.f32.mrb[0].mxu0 }
  0xf4   : > { %v472_v2 = vpop.f32.mrb[1].mxu0  ;;  %v487_v9 = vrot.slane %v470_v63, 7  ;;  %v500_v11 = vrot.slane %v470_v63, 1 }
  0xf5   : > { %1487 = vmatprep.mubr.msk.f32.mxu1 %vm547_vm4, %v472_v2  ;;  %v488_v16 = vrot.slane %v472_v2, 7  ;;  %v501_v17 = vrot.slane %v472_v2, 1  ;;  %v876_v2 = vld [vmem:[%s2892_s7 + $0x68] sm:$0xff] }
  0xf6   : > { %619 = vmatmul.mubr.f32.vlgmr.msra.gmra.mrb[0].mxu1 %v470_v63  ;;  %v872_v63 = vld [vmem:[%s2892_s7 + $0x48] sm:$0xff] }
  0xf7   : > { %1589 = vmatpush1.bf16.msra.mxu1 %v1588_v0  ;;  %v476_v5 = vpop.f32.mrb[2].mxu0  ;;  %v1648_v0 = vpack.c.bf16 %v869_v62, %v865_v61  ;;  %v912_v62 = vld [vmem:[%s2892_s7 + $0x188] sm:$0xff] }
  0xf8   : > { %v489_v12 = vrot.slane %v476_v5, 7  ;;  %v502_v13 = vrot.slane %v476_v5, 1  ;;  %v478_v14 = vpop.f32.mrb[3].mxu0  ;;  %1590 = vmatprep.subr.bf16.mxu1 %v1856_v10 }
  0xf9   : > { %v490_v18 = vrot.slane %v478_v14, 7  ;;  %v503_v19 = vrot.slane %v478_v14, 1  ;;  %1488 = vmatprep.mubr.msk.f32.mxu1 %vm547_vm4, %v478_v14 }
  0xfa   : > { %625 = vmatmul.mubr.f32.gmra.mrb[2].mxu1 %v476_v5  ;;  %v496_v20 = vsel %vm495_vm6, %v487_v9, %v489_v12  ;;  %v509_v21 = vsel %vm506_vm5, %v500_v11, %v502_v13  ;;  %v1618_v5 = vpack.c.bf16 %v876_v2, %v872_v63  ;;  %v873_v11 = vld [vmem:[%s2892_s7 + $0x50] sm:$0xff]  ;;  %v916_v63 = vld [vmem:[%s2892_s7 + $0x1a8] sm:$0xff] }
  0xfb   : > { %1592 = vmatpush1.bf16.msra.mxu1 %v1591_v6  ;;  %v482_v22 = vpop.f32.mrb[4].mxu0  ;;  %v510_v23 = vsel %vm506_vm5, %v501_v17, %v503_v19  ;;  %v497_v25 = vsel %vm495_vm6, %v488_v16, %v490_v18  ;;  %v1650_v6 = vpack.c.bf16 %v878_v4, %v874_v3  ;;  %v882_v17 = vld [vmem:[%s2892_s7 + $0x98] sm:$0xff]  ;;  %v1638_v2 = vpack.c.bf16 %v916_v63, %v912_v62  ;;  %v911_v4 = vld [vmem:[%s2892_s7 + $0x180] sm:$0xff]  ;;  %v1126_v62 = vld [vmem:[%s2893_s8 + $0x28] sm:$0xff] }
  0xfc   : > { %v491_v26 = vrot.slane %v482_v22, 7  ;;  %v504_v27 = vrot.slane %v482_v22, 1  ;;  %v484_v28 = vpop.f32.mrb[5].mxu0  ;;  %1491 = vmatprep.mubr.msk.f32.mxu1 %vm547_vm4, %v510_v23  ;;  %1593 = vmatprep.subr.bf16.mxu1 %v1856_v10  ;;  %v918_v3 = vld [vmem:[%s2892_s7 + $0x1b8] sm:$0xff] }
  0xfd   : > { %v492_v31 = vrot.slane %v484_v28, 7  ;;  %v505_v32 = vrot.slane %v484_v28, 1  ;;  %v892_v28 = vld [vmem:[%s2892_s7 + $0xe8] sm:$0xff] }
  0xfe   : > { %v498_v33 = vsel %vm495_vm6, %v491_v26, %v487_v9  ;;  %v507_v34 = vsel %vm506_vm5, %v502_v13, %v504_v27  ;;  %v875_v9 = vld [vmem:[%s2892_s7 + $0x60] sm:$0xff]  ;;  %v877_v13 = vld [vmem:[%s2892_s7 + $0x70] sm:$0xff]  ;;  %v888_v27 = vld [vmem:[%s2892_s7 + $0xc8] sm:$0xff] }
  0xff   : > { %1595 = vmatpush1.bf16.msra.mxu1 %v1594_v24  ;;  %v499_v35 = vsel %vm495_vm6, %v492_v31, %v488_v16  ;;  %v508_v37 = vsel %vm506_vm5, %v503_v19, %v505_v32  ;;  %v1620_v12 = vpack.c.bf16 %v875_v9, %v871_v8  ;;  %v1652_v14 = vpack.c.bf16 %v877_v13, %v873_v11  ;;  %v884_v16 = vld [vmem:[%s2892_s7 + $0xa8] sm:$0xff]  ;;  %v886_v19 = vld [vmem:[%s2892_s7 + $0xb8] sm:$0xff]  ;;  %v881_v24 = vld [vmem:[%s2892_s7 + $0x90] sm:$0xff] }
 0x100   : > { %1489 = vmatprep.mubr.msk.f32.mxu0 %vm547_vm4, %v499_v35  ;;  %1596 = vmatprep.subr.bf16.mxu1 %v1856_v10  ;;  %v1622_v18 = vpack.c.bf16 %v884_v16, %v880_v15  ;;  %v1654_v22 = vpack.c.bf16 %v886_v19, %v882_v17  ;;  %v1626_v30 = vpack.c.bf16 %v892_v28, %v888_v27  ;;  %v894_v31 = vld [vmem:[%s2892_s7 + $0xf8] sm:$0xff]  ;;  %v887_v32 = vld [vmem:[%s2892_s7 + $0xc0] sm:$0xff]  ;;  %v913_v9 = vld [vmem:[%s2892_s7 + $0x190] sm:$0xff] }
 0x101   : > { %720 = vmatmul.mubr.f32.vlgmr.msra.gmra.mrb[6].mxu0 %v498_v33  ;;  %v891_v33 = vld [vmem:[%s2892_s7 + $0xe0] sm:$0xff]  ;;  %v917_v11 = vld [vmem:[%s2892_s7 + $0x1b0] sm:$0xff]  ;;  %v920_v13 = vld [vmem:[%s2892_s7 + $0x1c8] sm:$0xff] }
 0x102   : > { %1490 = vmatprep.mubr.msk.f32.mxu0 %vm547_vm4, %v497_v25  ;;  %v885_v25 = vld [vmem:[%s2892_s7 + $0xb0] sm:$0xff]  ;;  %v1628_v35 = vpack.c.bf16 %v891_v33, %v887_v32  ;;  %v922_v15 = vld [vmem:[%s2892_s7 + $0x1d8] sm:$0xff]  ;;  %v1186_v27 = vld [vmem:[%s2893_s8 + $0x208] sm:$0xff] }
 0x103   : > { %1598 = vmatpush1.bf16.msra.mxu1 %v1597_v36  ;;  %v1656_v26 = vpack.c.bf16 %v885_v25, %v881_v24  ;;  %v889_v36 = vld [vmem:[%s2892_s7 + $0xd0] sm:$0xff]  ;;  %v926_v17 = vld [vmem:[%s2892_s7 + $0x1f8] sm:$0xff]  ;;  %v1122_v25 = vld [vmem:[%s2893_s8 + $0x8] sm:$0xff] }
 0x104   : > { %1599 = vmatprep.subr.bf16.mxu1 %v1856_v10  ;;  %v1674_v19 = vpack.c.bf16 %v926_v17, %v922_v15  ;;  %v1189_v15 = vld [vmem:[%s2893_s8 + $0x220] sm:$0xff]  ;;  %v1130_v17 = vld [vmem:[%s2893_s8 + $0x48] sm:$0xff] }
 0x105   : > { %725 = vmatmul.mubr.f32.gmra.mrb[8].mxu0 %v496_v20  ;;  %v879_v20 = vld [vmem:[%s2892_s7 + $0x80] sm:$0xff] }
 0x106   : > { %991 = vmatprep.mubr.f32.mxu0 %v1854_v7 }
 0x107   : > { %1601 = vmatpush1.bf16.msra.mxu1 %v1600_v40  ;;  %v900_v40 = vld [vmem:[%s2892_s7 + $0x128] sm:$0xff] }
 0x108   : > { %1602 = vmatprep.subr.bf16.mxu1 %v1856_v10  ;;  %v1630_v42 = vpack.c.bf16 %v900_v40, %v896_v39 }
 0x10b   : > { %1604 = vmatpush1.bf16.msra.mxu1 %v1603_v43  ;;  %v902_v43 = vld [vmem:[%s2892_s7 + $0x138] sm:$0xff] }
 0x10c   : > { %1605 = vmatprep.subr.bf16.mxu1 %v1856_v10 }
 0x10f   : > { %1607 = vmatpush1.bf16.msra.mxu1 %v1606_v46  ;;  %v1662_v46 = vpack.c.bf16 %v902_v43, %v898_v41 }
 0x110   : > { %1608 = vmatprep.subr.bf16.mxu1 %v1856_v10 }
 0x113   : > { %1610 = vmatpush1.bf16.msra.mxu1 %v1609_v49  ;;  %v901_v49 = vld [vmem:[%s2892_s7 + $0x130] sm:$0xff] }
 0x114   : > { %1611 = vmatprep.subr.bf16.mxu1 %v1856_v10  ;;  %v1614_v10 = vpack.c.bf16 %v868_v54, %v864_v53  ;;  %v1664_v50 = vpack.c.bf16 %v901_v49, %v897_v48  ;;  %v906_v53 = vld [vmem:[%s2892_s7 + $0x158] sm:$0xff] }
 0x115   : > { %v1666_v57 = vpack.c.bf16 %v910_v55, %v906_v53 }
 0x116   : > { %1615 = vmatprep.subr.bf16.mxu0 %v1614_v10  ;;  %v903_v10 = vld [vmem:[%s2892_s7 + $0x140] sm:$0xff] }
 0x117   : > { %1613 = vmatpush1.bf16.msra.mxu1 %v1612_v52  ;;  %1617 = vmatpush1.bf16.msra.mxu0 %v1616_v60  ;;  %v908_v52 = vld [vmem:[%s2892_s7 + $0x168] sm:$0xff]  ;;  %v1636_v58 = vpack.c.bf16 %v907_v56, %v903_v10  ;;  %v909_v60 = vld [vmem:[%s2892_s7 + $0x170] sm:$0xff]  ;;  %v1494_v10 = vld [vmem:[%s2891_s6] ss:$0 sm:$0xff] }
 0x118   : > { %1647 = vmatprep.subr.bf16.mxu1 %v1646_v59  ;;  %1619 = vmatprep.subr.bf16.mxu0 %v1618_v5  ;;  %v1634_v54 = vpack.c.bf16 %v908_v52, %v904_v51  ;;  %v905_v59 = vld [vmem:[%s2892_s7 + $0x150] sm:$0xff]  ;;  %v915_v5 = vld [vmem:[%s2892_s7 + $0x1a0] sm:$0xff] }
 0x119   : > { %v1668_v61 = vpack.c.bf16 %v909_v60, %v905_v59  ;;  %v1640_v8 = vpack.c.bf16 %v915_v5, %v911_v4  ;;  %v1123_v59 = vld [vmem:[%s2893_s8 + $0x10] sm:$0xff]  ;;  %v1185_v60 = vld [vmem:[%s2893_s8 + $0x200] sm:$0xff]  ;;  %v1192_v4 = vld [vmem:[%s2893_s8 + $0x238] sm:$0xff] }
 0x11a   : > { %821 = vmatmul.mubr.f32.vlgmr.msra.gmra.mrb[4].mxu1 %v509_v21  ;;  %v883_v21 = vld [vmem:[%s2892_s7 + $0xa0] sm:$0xff] }
 0x11b   : > { %1492 = vmatprep.mubr.msk.f32.mxu1 %vm547_vm4, %v508_v37  ;;  %1649 = vmatpush1.bf16.msra.mxu1 %v1648_v0  ;;  %v1624_v23 = vpack.c.bf16 %v883_v21, %v879_v20  ;;  %v893_v37 = vld [vmem:[%s2892_s7 + $0xf0] sm:$0xff]  ;;  %v914_v0 = vld [vmem:[%s2892_s7 + $0x198] sm:$0xff]  ;;  %v923_v20 = vld [vmem:[%s2892_s7 + $0x1e0] sm:$0xff] }
 0x11c   : > { %1651 = vmatprep.subr.bf16.mxu1 %v1650_v6  ;;  %1621 = vmatpush1.bf16.msra.mxu0 %v1620_v12  ;;  %v1660_v38 = vpack.c.bf16 %v893_v37, %v889_v36  ;;  %v1670_v6 = vpack.c.bf16 %v918_v3, %v914_v0  ;;  %v1672_v12 = vpack.c.bf16 %v917_v11, %v913_v9  ;;  %v921_v21 = vld [vmem:[%s2892_s7 + $0x1d0] sm:$0xff]  ;;  %v1190_v3 = vld [vmem:[%s2893_s8 + $0x228] sm:$0xff]  ;;  %v1125_v11 = vld [vmem:[%s2893_s8 + $0x20] sm:$0xff] }
 0x11d   : > { %1623 = vmatprep.subr.bf16.mxu0 %v1622_v18  ;;  %v919_v18 = vld [vmem:[%s2892_s7 + $0x1c0] sm:$0xff] }
 0x11e   : > { %826 = vmatmul.mubr.f32.gmra.mrb[6].mxu1 %v507_v34  ;;  %v1658_v34 = vpack.c.bf16 %v894_v31, %v890_v29  ;;  %v1188_v29 = vld [vmem:[%s2893_s8 + $0x218] sm:$0xff] }
 0x11f   : > { %1068 = vmatprep.mubr.f32.mxu1 %v1854_v7  ;;  %1653 = vmatpush1.bf16.msra.mxu1 %v1652_v14  ;;  %v924_v14 = vld [vmem:[%s2892_s7 + $0x1e8] sm:$0xff] }
 0x120   : > { %1655 = vmatprep.subr.bf16.mxu1 %v1654_v22  ;;  %1625 = vmatpush1.bf16.msra.mxu0 %v1624_v23  ;;  %v1642_v16 = vpack.c.bf16 %v924_v14, %v920_v13  ;;  %v925_v22 = vld [vmem:[%s2892_s7 + $0x1f0] sm:$0xff]  ;;  %v1644_v23 = vpack.c.bf16 %v923_v20, %v919_v18  ;;  %v1746_v14 = vpack.c.bf16 %v1192_v4, %v1190_v3  ;;  %v1194_v20 = vld [vmem:[%s2893_s8 + $0x248] sm:$0xff]  ;;  %v1148_v3 = vld [vmem:[%s2893_s8 + $0xd8] sm:$0xff] }
 0x121   : > { %1627 = vmatprep.subr.bf16.mxu0 %v1626_v30  ;;  %v1676_v24 = vpack.c.bf16 %v925_v22, %v921_v21  ;;  %v1742_v30 = vpack.c.bf16 %v1188_v29, %v1186_v27  ;;  %v1196_v21 = vld [vmem:[%s2893_s8 + $0x258] sm:$0xff]  ;;  %v1195_v29 = vld [vmem:[%s2893_s8 + $0x250] sm:$0xff]  ;;  %v1210_v4 = vld [vmem:[%s2893_s8 + $0x2c8] sm:$0xff] }
 0x123   : > { %1657 = vmatpush1.bf16.msra.mxu1 %v1656_v26  ;;  %v1124_v26 = vld [vmem:[%s2893_s8 + $0x18] sm:$0xff] }
 0x124   : > { %1659 = vmatprep.subr.bf16.mxu1 %v1658_v34  ;;  %1629 = vmatpush1.bf16.msra.mxu0 %v1628_v35  ;;  %v1678_v28 = vpack.c.bf16 %v1124_v26, %v1122_v25  ;;  %v1129_v25 = vld [vmem:[%s2893_s8 + $0x40] sm:$0xff]  ;;  %v1131_v26 = vld [vmem:[%s2893_s8 + $0x50] sm:$0xff] }
 0x125   : > { %1631 = vmatprep.subr.bf16.mxu0 %v1630_v42 }
 0x127   : > { %1661 = vmatpush1.bf16.msra.mxu1 %v1660_v38 }
 0x128   : > { %1663 = vmatprep.subr.bf16.mxu1 %v1662_v46  ;;  %1633 = vmatpush1.bf16.msra.mxu0 %v1632_v47 }
 0x129   : > { %1635 = vmatprep.subr.bf16.mxu0 %v1634_v54  ;;  %v1493_v54 = vld [vmem:[%s2890_s5] ss:$0 sm:$0xff] }
 0x12b   : > { %1665 = vmatpush1.bf16.msra.mxu1 %v1664_v50 }
 0x12c   : > { %1667 = vmatprep.subr.bf16.mxu1 %v1666_v57  ;;  %1637 = vmatpush1.bf16.msra.mxu0 %v1636_v58  ;;  %v1121_v58 = vld [vmem:[%s2893_s8] sm:$0xff] }
 0x12d   : > { %1639 = vmatprep.subr.bf16.mxu0 %v1638_v2  ;;  %v1128_v2 = vld [vmem:[%s2893_s8 + $0x38] sm:$0xff] }
 0x12e   : > { %v1682_v13 = vpack.c.bf16 %v1128_v2, %v1126_v62  ;;  %v1146_v2 = vld [vmem:[%s2893_s8 + $0xc8] sm:$0xff] }
 0x12f   : > { %1669 = vmatpush1.bf16.msra.mxu1 %v1668_v61  ;;  %v1187_v61 = vld [vmem:[%s2893_s8 + $0x210] sm:$0xff] }
 0x130   : > { %1671 = vmatprep.subr.bf16.mxu1 %v1670_v6  ;;  %1641 = vmatpush1.bf16.msra.mxu0 %v1640_v8  ;;  %v1680_v8 = vpack.c.bf16 %v1123_v59, %v1121_v58  ;;  %v1744_v9 = vpack.c.bf16 %v1187_v61, %v1185_v60  ;;  %v1141_v59 = vld [vmem:[%s2893_s8 + $0xa0] sm:$0xff]  ;;  %v1143_v60 = vld [vmem:[%s2893_s8 + $0xb0] sm:$0xff] }
 0x131   : > { %1643 = vmatprep.subr.bf16.mxu0 %v1642_v16  ;;  %v1191_v16 = vld [vmem:[%s2893_s8 + $0x230] sm:$0xff] }
 0x133   : > { %1673 = vmatpush1.bf16.msra.mxu1 %v1672_v12  ;;  %v1127_v12 = vld [vmem:[%s2893_s8 + $0x30] sm:$0xff] }
 0x134   : > { %1675 = vmatprep.subr.bf16.mxu1 %v1674_v19  ;;  %1645 = vmatpush1.bf16.msra.mxu0 %v1644_v23  ;;  %v1132_v19 = vld [vmem:[%s2893_s8 + $0x58] sm:$0xff]  ;;  %v1684_v23 = vpack.c.bf16 %v1127_v12, %v1125_v11  ;;  %v1147_v11 = vld [vmem:[%s2893_s8 + $0xd0] sm:$0xff]  ;;  %v1702_v12 = vpack.c.bf16 %v1148_v3, %v1146_v2  ;;  %v1230_v3 = vld [vmem:[%s2893_s8 + $0x368] sm:$0xff] }
 0x135   : > { %1743 = vmatprep.subr.bf16.mxu0 %v1742_v30  ;;  %v1686_v27 = vpack.c.bf16 %v1132_v19, %v1130_v17  ;;  %v1134_v30 = vld [vmem:[%s2893_s8 + $0x68] sm:$0xff]  ;;  %v1152_v17 = vld [vmem:[%s2893_s8 + $0xf8] sm:$0xff] }
 0x136   : > { %v1216_v19 = vld [vmem:[%s2893_s8 + $0x2f8] sm:$0xff] }
 0x137   : > { %1677 = vmatpush1.bf16.msra.mxu1 %v1676_v24  ;;  %v1748_v24 = vpack.c.bf16 %v1191_v16, %v1189_v15  ;;  %v1211_v15 = vld [vmem:[%s2893_s8 + $0x2d0] sm:$0xff]  ;;  %v1150_v16 = vld [vmem:[%s2893_s8 + $0xe8] sm:$0xff]  ;;  %v1168_v2 = vld [vmem:[%s2893_s8 + $0x178] sm:$0xff] }
 0x138   : > { %1679 = vmatprep.subr.bf16.mxu1 %v1678_v28  ;;  %v1750_v28 = vpack.c.bf16 %v1196_v21, %v1194_v20 }
 0x1c9   : > { %v620_v31 = vpop.f32.mrb[0].mxu1 }
 0x1ca   : > { %v622_v32 = vpop.f32.mrb[1].mxu1 }
 0x1cd   : > { %v626_v33 = vpop.f32.mrb[2].mxu1 }
 0x1ce   : > { %v628_v34 = vpop.f32.mrb[3].mxu1 }
 0x1d4   : > { %v721_v35 = vpop.f32.mrb[6].mxu0 }
 0x1d5   : > { %v730_v36 = vadd.f32 %v721_v35, %v620_v31  ;;  %v723_v37 = vpop.f32.mrb[7].mxu0  ;;  %v1136_v31 = vld [vmem:[%s2893_s8 + $0x78] sm:$0xff] }
 0x1d6   : > { %v1135_v37 = vld [vmem:[%s2893_s8 + $0x70] sm:$0xff] }
 0x1d8   : > { %v726_v38 = vpop.f32.mrb[8].mxu0 }
 0x1d9   : > { %v731_v39 = vadd.f32 %v726_v38, %v626_v33  ;;  %v728_v40 = vpop.f32.mrb[9].mxu0  ;;  %v1200_v33 = vld [vmem:[%s2893_s8 + $0x278] sm:$0xff]  ;;  %v1690_v38 = vpack.c.bf16 %v1136_v31, %v1134_v30 }
 0x1da   : > { %v1197_v40 = vld [vmem:[%s2893_s8 + $0x260] sm:$0xff]  ;;  %v1220_v30 = vld [vmem:[%s2893_s8 + $0x318] sm:$0xff] }
 0x1ed   : > { %v822_v41 = vpop.f32.mrb[4].mxu1 }
 0x1ee   : > { %v831_v42 = vadd.f32 %v822_v41, %v730_v36  ;;  %v824_v43 = vpop.f32.mrb[5].mxu1  ;;  %v1133_v36 = vld [vmem:[%s2893_s8 + $0x60] sm:$0xff]  ;;  %v1199_v41 = vld [vmem:[%s2893_s8 + $0x270] sm:$0xff] }
 0x1ef   : > { %v1140_v43 = vld [vmem:[%s2893_s8 + $0x98] sm:$0xff] }
 0x1f0   : > { %v835_v44 = vmul.f32 0.70710677, %v831_v42  ;;  %v833_v50 = vmul.f32 0.5, %v831_v42  ;;  %v1138_v42 = vld [vmem:[%s2893_s8 + $0x88] sm:$0xff] }
 0x1f1   : > { %v827_v45 = vpop.f32.mrb[6].mxu1 }
 0x1f2   : > { %1826 = verf.f32 %v835_v44  ;;  %v832_v46 = vadd.f32 %v827_v45, %v731_v39  ;;  %v829_v47 = vpop.f32.mrb[7].mxu1  ;;  %v1202_v44 = vld [vmem:[%s2893_s8 + $0x288] sm:$0xff]  ;;  %v1204_v45 = vld [vmem:[%s2893_s8 + $0x298] sm:$0xff] }
 0x1f3   : > { %v1756_v47 = vpack.c.bf16 %v1199_v41, %v1197_v40  ;;  %v1160_v40 = vld [vmem:[%s2893_s8 + $0x138] sm:$0xff]  ;;  %v1222_v41 = vld [vmem:[%s2893_s8 + $0x328] sm:$0xff] }
 0x1f4   : > { %v836_v48 = vmul.f32 0.70710677, %v832_v46  ;;  %v834_v56 = vmul.f32 0.5, %v832_v46  ;;  %v1692_v46 = vpack.c.bf16 %v1135_v37, %v1133_v36  ;;  %v1217_v37 = vld [vmem:[%s2893_s8 + $0x300] sm:$0xff] }
 0x1f6   : > { %1828 = verf.f32 %v836_v48  ;;  %v1137_v48 = vld [vmem:[%s2893_s8 + $0x80] sm:$0xff] }
 0x1fc   : > { %v1827_v49 = vpop.eup %1826 }
 0x1fd   : > { %v839_v51 = vadd.f32 1.0, %v1827_v49  ;;  %v1139_v49 = vld [vmem:[%s2893_s8 + $0x90] sm:$0xff] }
 0x1ff   : > { %v841_v52 = vmul.f32 %v839_v51, %v833_v50  ;;  %v1694_v50 = vpack.c.bf16 %v1140_v43, %v1138_v42  ;;  %v1758_v51 = vpack.c.bf16 %v1204_v45, %v1202_v44  ;;  %v1224_v42 = vld [vmem:[%s2893_s8 + $0x338] sm:$0xff]  ;;  %v1157_v45 = vld [vmem:[%s2893_s8 + $0x120] sm:$0xff] }
 0x200   : > { %v1829_v53 = vpop.eup %1828 }
 0x201   : > { %v843_v55 = vadd.f32 %v841_v52, %v622_v32  ;;  %v840_v57 = vadd.f32 1.0, %v1829_v53  ;;  %v1198_v32 = vld [vmem:[%s2893_s8 + $0x268] sm:$0xff]  ;;  %v1201_v52 = vld [vmem:[%s2893_s8 + $0x280] sm:$0xff]  ;;  %v1203_v53 = vld [vmem:[%s2893_s8 + $0x290] sm:$0xff] }
 0x202   : > { %v1754_v39 = vpack.c.bf16 %v1200_v33, %v1198_v32  ;;  %v1760_v58 = vpack.c.bf16 %v1203_v53, %v1201_v52  ;;  %v1153_v33 = vld [vmem:[%s2893_s8 + $0x100] sm:$0xff]  ;;  %v1164_v52 = vld [vmem:[%s2893_s8 + $0x158] sm:$0xff]  ;;  %v1226_v53 = vld [vmem:[%s2893_s8 + $0x348] sm:$0xff] }
 0x203   : > { %v852_v63 = vmul.f32 %v1493_v54, %v843_v55  ;;  %v842_v0 = vmul.f32 %v840_v57, %v834_v56  ;;  %v1144_v55 = vld [vmem:[%s2893_s8 + $0xb8] sm:$0xff]  ;;  %v1696_v57 = vpack.c.bf16 %v1139_v49, %v1137_v48  ;;  %v1778_v48 = vpack.c.bf16 %v1224_v42, %v1222_v41  ;;  %v1221_v49 = vld [vmem:[%s2893_s8 + $0x320] sm:$0xff] }
 0x204   : > { %v1208_v56 = vld [vmem:[%s2893_s8 + $0x2b8] sm:$0xff] }
 0x205   : > { %v861_v5 = vadd.f32 %v1494_v10, %v852_v63  ;;  %v844_v6 = vadd.f32 %v842_v0, %v628_v34  ;;  %v1688_v34 = vpack.c.bf16 %v1131_v26, %v1129_v25  ;;  %v1205_v63 = vld [vmem:[%s2893_s8 + $0x2a0] sm:$0xff]  ;;  %v1207_v0 = vld [vmem:[%s2893_s8 + $0x2b0] sm:$0xff]  ;;  %v1244_v42 = vld [vmem:[%s2893_s8 + $0x3d8] sm:$0xff] }
 0x206   : > { %v1213_v26 = vld [vmem:[%s2893_s8 + $0x2e0] sm:$0xff] }
 0x207   : > { %992 = vmatmul.mubr.f32.vlgmr.msra.gmra.mrb[10].mxu0 %v861_v5  ;;  %1069 = vmatmul.mubr.f32.vlgmr.msra.gmra.mrb[8].mxu1 %v861_v5  ;;  %v853_v18 = vmul.f32 %v1493_v54, %v844_v6  ;;  %v1142_v54 = vld [vmem:[%s2893_s8 + $0xa8] sm:$0xff]  ;;  %v1212_v5 = vld [vmem:[%s2893_s8 + $0x2d8] sm:$0xff]  ;;  %v1700_v6 = vpack.c.bf16 %v1143_v60, %v1141_v59  ;;  %v1163_v59 = vld [vmem:[%s2893_s8 + $0x150] sm:$0xff] }
 0x208   : > { %997 = vmatprep.mubr.f32.mxu0 %v1854_v7  ;;  %1074 = vmatprep.mubr.f32.mxu1 %v1854_v7  ;;  %v1193_v7 = vld [vmem:[%s2893_s8 + $0x240] sm:$0xff]  ;;  %v1698_v61 = vpack.c.bf16 %v1144_v55, %v1142_v54  ;;  %v1228_v54 = vld [vmem:[%s2893_s8 + $0x358] sm:$0xff] }
 0x209   : > { %v862_v22 = vadd.f32 %v1494_v10, %v853_v18  ;;  %1681 = vmatpush1.bf16.msra.mxu1 %v1680_v8  ;;  %1745 = vmatpush1.bf16.msra.mxu0 %v1744_v9  ;;  %v1752_v35 = vpack.c.bf16 %v1195_v29, %v1193_v7  ;;  %v1206_v10 = vld [vmem:[%s2893_s8 + $0x2a8] sm:$0xff]  ;;  %v1764_v8 = vpack.c.bf16 %v1207_v0, %v1205_v63  ;;  %v1145_v9 = vld [vmem:[%s2893_s8 + $0xc0] sm:$0xff]  ;;  %v1156_v7 = vld [vmem:[%s2893_s8 + $0x118] sm:$0xff] }
 0x20a   : > { %1683 = vmatprep.subr.bf16.mxu1 %v1682_v13  ;;  %1747 = vmatprep.subr.bf16.mxu0 %v1746_v14  ;;  %v1762_v62 = vpack.c.bf16 %v1208_v56, %v1206_v10  ;;  %v1766_v13 = vpack.c.bf16 %v1212_v5, %v1210_v4  ;;  %v1209_v14 = vld [vmem:[%s2893_s8 + $0x2c0] sm:$0xff]  ;;  %v1214_v18 = vld [vmem:[%s2893_s8 + $0x2e8] sm:$0xff]  ;;  %v1704_v20 = vpack.c.bf16 %v1147_v11, %v1145_v9  ;;  %v1232_v5 = vld [vmem:[%s2893_s8 + $0x378] sm:$0xff] }
 0x20b   : > { %998 = vmatmul.mubr.f32.gmra.mrb[12].mxu0 %v862_v22  ;;  %1075 = vmatmul.mubr.f32.gmra.mrb[10].mxu1 %v862_v22  ;;  %v1768_v21 = vpack.c.bf16 %v1211_v15, %v1209_v14  ;;  %v1149_v22 = vld [vmem:[%s2893_s8 + $0xe0] sm:$0xff]  ;;  %v1770_v25 = vpack.c.bf16 %v1216_v19, %v1214_v18  ;;  %v1218_v29 = vld [vmem:[%s2893_s8 + $0x308] sm:$0xff]  ;;  %v1167_v9 = vld [vmem:[%s2893_s8 + $0x170] sm:$0xff] }
 0x20c   : > { %v1774_v36 = vpack.c.bf16 %v1220_v30, %v1218_v29  ;;  %v1161_v56 = vld [vmem:[%s2893_s8 + $0x140] sm:$0xff]  ;;  %v1166_v0 = vld [vmem:[%s2893_s8 + $0x168] sm:$0xff]  ;;  %v1236_v19 = vld [vmem:[%s2893_s8 + $0x398] sm:$0xff] }
 0x20d   : > { %1685 = vmatpush1.bf16.msra.mxu1 %v1684_v23  ;;  %1749 = vmatpush1.bf16.msra.mxu0 %v1748_v24  ;;  %v1151_v23 = vld [vmem:[%s2893_s8 + $0xf0] sm:$0xff]  ;;  %v1706_v24 = vpack.c.bf16 %v1152_v17, %v1150_v16  ;;  %v1225_v60 = vld [vmem:[%s2893_s8 + $0x340] sm:$0xff]  ;;  %v1722_v4 = vpack.c.bf16 %v1168_v2, %v1166_v0  ;;  %v1170_v15 = vld [vmem:[%s2893_s8 + $0x188] sm:$0xff] }
 0x20e   : > { %1687 = vmatprep.subr.bf16.mxu1 %v1686_v27  ;;  %1751 = vmatprep.subr.bf16.mxu0 %v1750_v28  ;;  %v1215_v27 = vld [vmem:[%s2893_s8 + $0x2f0] sm:$0xff]  ;;  %v1154_v28 = vld [vmem:[%s2893_s8 + $0x108] sm:$0xff]  ;;  %v1708_v31 = vpack.c.bf16 %v1151_v23, %v1149_v22  ;;  %v1229_v11 = vld [vmem:[%s2893_s8 + $0x360] sm:$0xff] }
 0x20f   : > { %v1772_v32 = vpack.c.bf16 %v1215_v27, %v1213_v26  ;;  %v1172_v16 = vld [vmem:[%s2893_s8 + $0x198] sm:$0xff]  ;;  %v1234_v17 = vld [vmem:[%s2893_s8 + $0x388] sm:$0xff] }
 0x210   : > { %v1726_v18 = vpack.c.bf16 %v1172_v16, %v1170_v15  ;;  %v1790_v22 = vpack.c.bf16 %v1236_v19, %v1234_v17  ;;  %v1174_v27 = vld [vmem:[%s2893_s8 + $0x1a8] sm:$0xff]  ;;  %v1240_v30 = vld [vmem:[%s2893_s8 + $0x3b8] sm:$0xff] }
 0x211   : > { %1689 = vmatpush1.bf16.msra.mxu1 %v1688_v34  ;;  %1753 = vmatpush1.bf16.msra.mxu0 %v1752_v35  ;;  %v1155_v34 = vld [vmem:[%s2893_s8 + $0x110] sm:$0xff]  ;;  %v1710_v35 = vpack.c.bf16 %v1156_v7, %v1154_v28  ;;  %v1176_v28 = vld [vmem:[%s2893_s8 + $0x1b8] sm:$0xff]  ;;  %v1238_v7 = vld [vmem:[%s2893_s8 + $0x3a8] sm:$0xff] }
 0x212   : > { %1691 = vmatprep.subr.bf16.mxu1 %v1690_v38  ;;  %1755 = vmatprep.subr.bf16.mxu0 %v1754_v39  ;;  %v1219_v38 = vld [vmem:[%s2893_s8 + $0x310] sm:$0xff]  ;;  %v1158_v39 = vld [vmem:[%s2893_s8 + $0x128] sm:$0xff]  ;;  %v1712_v43 = vpack.c.bf16 %v1155_v34, %v1153_v33  ;;  %v1730_v29 = vpack.c.bf16 %v1176_v28, %v1174_v27  ;;  %v1794_v33 = vpack.c.bf16 %v1240_v30, %v1238_v7 }
 0x213   : > { %v1776_v44 = vpack.c.bf16 %v1219_v38, %v1217_v37  ;;  %v1178_v38 = vld [vmem:[%s2893_s8 + $0x1c8] sm:$0xff] }
 0x215   : > { %1693 = vmatpush1.bf16.msra.mxu1 %v1692_v46  ;;  %1757 = vmatpush1.bf16.msra.mxu0 %v1756_v47  ;;  %v1159_v46 = vld [vmem:[%s2893_s8 + $0x130] sm:$0xff]  ;;  %v1714_v47 = vpack.c.bf16 %v1160_v40, %v1158_v39  ;;  %v1180_v39 = vld [vmem:[%s2893_s8 + $0x1d8] sm:$0xff]  ;;  %v1242_v40 = vld [vmem:[%s2893_s8 + $0x3c8] sm:$0xff] }
 0x216   : > { %1695 = vmatprep.subr.bf16.mxu1 %v1694_v50  ;;  %1759 = vmatprep.subr.bf16.mxu0 %v1758_v51  ;;  %v1223_v50 = vld [vmem:[%s2893_s8 + $0x330] sm:$0xff]  ;;  %v1162_v51 = vld [vmem:[%s2893_s8 + $0x148] sm:$0xff]  ;;  %v1716_v55 = vpack.c.bf16 %v1159_v46, %v1157_v45  ;;  %v1734_v41 = vpack.c.bf16 %v1180_v39, %v1178_v38  ;;  %v1798_v45 = vpack.c.bf16 %v1244_v42, %v1242_v40 }
 0x217   : > { %v1780_v10 = vpack.c.bf16 %v1223_v50, %v1221_v49  ;;  %v1182_v50 = vld [vmem:[%s2893_s8 + $0x1e8] sm:$0xff] }
 0x219   : > { %1697 = vmatpush1.bf16.msra.mxu1 %v1696_v57  ;;  %1761 = vmatpush1.bf16.msra.mxu0 %v1760_v58  ;;  %v1718_v57 = vpack.c.bf16 %v1164_v52, %v1162_v51  ;;  %v1782_v58 = vpack.c.bf16 %v1228_v54, %v1226_v53  ;;  %v1184_v51 = vld [vmem:[%s2893_s8 + $0x1f8] sm:$0xff]  ;;  %v1246_v52 = vld [vmem:[%s2893_s8 + $0x3e8] sm:$0xff] }
 0x21a   : > { %1699 = vmatprep.subr.bf16.mxu1 %v1698_v61  ;;  %1763 = vmatprep.subr.bf16.mxu0 %v1762_v62  ;;  %v1227_v61 = vld [vmem:[%s2893_s8 + $0x350] sm:$0xff]  ;;  %v1720_v62 = vpack.c.bf16 %v1163_v59, %v1161_v56  ;;  %v1738_v53 = vpack.c.bf16 %v1184_v51, %v1182_v50  ;;  %v1248_v54 = vld [vmem:[%s2893_s8 + $0x3f8] sm:$0xff] }
 0x21b   : > { %v1784_v63 = vpack.c.bf16 %v1227_v61, %v1225_v60  ;;  %v1802_v56 = vpack.c.bf16 %v1248_v54, %v1246_v52  ;;  %v1247_v59 = vld [vmem:[%s2893_s8 + $0x3f0] sm:$0xff] }
 0x21d   : > { %1701 = vmatpush1.bf16.msra.mxu1 %v1700_v6  ;;  %1765 = vmatpush1.bf16.msra.mxu0 %v1764_v8  ;;  %v1786_v6 = vpack.c.bf16 %v1232_v5, %v1230_v3  ;;  %v1165_v8 = vld [vmem:[%s2893_s8 + $0x160] sm:$0xff] }
 0x21e   : > { %1703 = vmatprep.subr.bf16.mxu1 %v1702_v12  ;;  %1767 = vmatprep.subr.bf16.mxu0 %v1766_v13  ;;  %v1724_v12 = vpack.c.bf16 %v1167_v9, %v1165_v8  ;;  %v1231_v13 = vld [vmem:[%s2893_s8 + $0x370] sm:$0xff] }
 0x21f   : > { %v1788_v14 = vpack.c.bf16 %v1231_v13, %v1229_v11 }
 0x221   : > { %1705 = vmatpush1.bf16.msra.mxu1 %v1704_v20  ;;  %1769 = vmatpush1.bf16.msra.mxu0 %v1768_v21  ;;  %v1169_v20 = vld [vmem:[%s2893_s8 + $0x180] sm:$0xff]  ;;  %v1171_v21 = vld [vmem:[%s2893_s8 + $0x190] sm:$0xff] }
 0x222   : > { %1707 = vmatprep.subr.bf16.mxu1 %v1706_v24  ;;  %1771 = vmatprep.subr.bf16.mxu0 %v1770_v25  ;;  %v1728_v23 = vpack.c.bf16 %v1171_v21, %v1169_v20  ;;  %v1233_v24 = vld [vmem:[%s2893_s8 + $0x380] sm:$0xff]  ;;  %v1235_v25 = vld [vmem:[%s2893_s8 + $0x390] sm:$0xff] }
 0x223   : > { %v1792_v26 = vpack.c.bf16 %v1235_v25, %v1233_v24 }
 0x225   : > { %1709 = vmatpush1.bf16.msra.mxu1 %v1708_v31  ;;  %1773 = vmatpush1.bf16.msra.mxu0 %v1772_v32  ;;  %v1173_v31 = vld [vmem:[%s2893_s8 + $0x1a0] sm:$0xff]  ;;  %v1175_v32 = vld [vmem:[%s2893_s8 + $0x1b0] sm:$0xff] }
 0x226   : > { %1711 = vmatprep.subr.bf16.mxu1 %v1710_v35  ;;  %1775 = vmatprep.subr.bf16.mxu0 %v1774_v36  ;;  %v1732_v34 = vpack.c.bf16 %v1175_v32, %v1173_v31  ;;  %v1237_v35 = vld [vmem:[%s2893_s8 + $0x3a0] sm:$0xff]  ;;  %v1239_v36 = vld [vmem:[%s2893_s8 + $0x3b0] sm:$0xff] }
 0x227   : > { %v1796_v37 = vpack.c.bf16 %v1239_v36, %v1237_v35 }
 0x229   : > { %1713 = vmatpush1.bf16.msra.mxu1 %v1712_v43  ;;  %1777 = vmatpush1.bf16.msra.mxu0 %v1776_v44  ;;  %v1177_v43 = vld [vmem:[%s2893_s8 + $0x1c0] sm:$0xff]  ;;  %v1179_v44 = vld [vmem:[%s2893_s8 + $0x1d0] sm:$0xff] }
 0x22a   : > { %1715 = vmatprep.subr.bf16.mxu1 %v1714_v47  ;;  %1779 = vmatprep.subr.bf16.mxu0 %v1778_v48  ;;  %v1736_v46 = vpack.c.bf16 %v1179_v44, %v1177_v43  ;;  %v1241_v47 = vld [vmem:[%s2893_s8 + $0x3c0] sm:$0xff]  ;;  %v1243_v48 = vld [vmem:[%s2893_s8 + $0x3d0] sm:$0xff] }
 0x22b   : > { %v1800_v49 = vpack.c.bf16 %v1243_v48, %v1241_v47  ;;  %v1253_v47 = vsub.s32 0, %v2205_v1  ;;  %v1249_v48 = vld [vmem:[%s2894_s9] sm:$0x3] }
 0x22d   : > { %1717 = vmatpush1.bf16.msra.mxu1 %v1716_v55  ;;  %1781 = vmatpush1.bf16.msra.mxu0 %v1780_v10  ;;  %v1181_v55 = vld [vmem:[%s2893_s8 + $0x1e0] sm:$0xff]  ;;  %v1183_v10 = vld [vmem:[%s2893_s8 + $0x1f0] sm:$0xff]  ;;  %v1254_v50 = vrot.slane %v1249_v48, %v1253_v47 }
 0x22e   : > { %1719 = vmatprep.subr.bf16.mxu1 %v1718_v57  ;;  %1783 = vmatprep.subr.bf16.mxu0 %v1782_v58  ;;  %v1740_v57 = vpack.c.bf16 %v1183_v10, %v1181_v55  ;;  %v1245_v58 = vld [vmem:[%s2893_s8 + $0x3e0] sm:$0xff] }
 0x22f   : > { %v1804_v60 = vpack.c.bf16 %v1247_v59, %v1245_v58 }
 0x231   : > { %1721 = vmatpush1.bf16.msra.mxu1 %v1720_v62  ;;  %1785 = vmatpush1.bf16.msra.mxu0 %v1784_v63 }
 0x232   : > { %1723 = vmatprep.subr.bf16.mxu1 %v1722_v4  ;;  %1787 = vmatprep.subr.bf16.mxu0 %v1786_v6 }
 0x235   : > { %1725 = vmatpush1.bf16.msra.mxu1 %v1724_v12  ;;  %1789 = vmatpush1.bf16.msra.mxu0 %v1788_v14 }
 0x236   : > { %1727 = vmatprep.subr.bf16.mxu1 %v1726_v18  ;;  %1791 = vmatprep.subr.bf16.mxu0 %v1790_v22 }
 0x239   : > { %1729 = vmatpush1.bf16.msra.mxu1 %v1728_v23  ;;  %1793 = vmatpush1.bf16.msra.mxu0 %v1792_v26 }
 0x23a   : > { %1731 = vmatprep.subr.bf16.mxu1 %v1730_v29  ;;  %1795 = vmatprep.subr.bf16.mxu0 %v1794_v33 }
 0x23d   : > { %1733 = vmatpush1.bf16.msra.mxu1 %v1732_v34  ;;  %1797 = vmatpush1.bf16.msra.mxu0 %v1796_v37 }
 0x23e   : > { %1735 = vmatprep.subr.bf16.mxu1 %v1734_v41  ;;  %1799 = vmatprep.subr.bf16.mxu0 %v1798_v45 }
 0x241   : > { %1737 = vmatpush1.bf16.msra.mxu1 %v1736_v46  ;;  %1801 = vmatpush1.bf16.msra.mxu0 %v1800_v49  ;;  %v1257_v49 = vsub.s32 1, %v2205_v1 }
 0x242   : > { %1739 = vmatprep.subr.bf16.mxu1 %v1738_v53  ;;  %1803 = vmatprep.subr.bf16.mxu0 %v1802_v56 }
 0x243   : > { %v1258_v51 = vrot.slane %v1249_v48, %v1257_v49 }
 0x245   : > { %1741 = vmatpush1.bf16.msra.mxu1 %v1740_v57  ;;  %1805 = vmatpush1.bf16.msra.mxu0 %v1804_v60 }
 0x2da   : > { %v993_v61 = vpop.f32.mrb[10].mxu0  ;;  %v1070_v62 = vpop.f32.mrb[8].mxu1 }
 0x2db   : > { %v1089_v63 = vmul.f32 0.70710677, %v993_v61  ;;  %v1091_v0 = vmul.f32 0.70710677, %v1070_v62  ;;  %v995_v2 = vpop.f32.mrb[11].mxu0  ;;  %v1072_v3 = vpop.f32.mrb[9].mxu1 }
 0x2dc   : > { %v1090_v4 = vmul.f32 0.70710677, %v995_v2  ;;  %v1092_v5 = vmul.f32 0.70710677, %v1072_v3  ;;  %v1082_v22 = vmul.f32 0.5, %v995_v2  ;;  %v1081_v25 = vmul.f32 0.5, %v993_v61 }
 0x2dd   : > { %1830 = verf.f32 %v1089_v63  ;;  %v1084_v26 = vmul.f32 0.5, %v1072_v3  ;;  %v1083_v7 = vmul.f32 0.5, %v1070_v62 }
 0x2de   : > { %1832 = verf.f32 %v1091_v0  ;;  %v999_v6 = vpop.f32.mrb[12].mxu0  ;;  %v1076_v8 = vpop.f32.mrb[10].mxu1 }
 0x2df   : > { %1834 = verf.f32 %v1090_v4  ;;  %v1093_v9 = vmul.f32 0.70710677, %v999_v6  ;;  %v1001_v11 = vpop.f32.mrb[13].mxu0  ;;  %v1078_v12 = vpop.f32.mrb[11].mxu1  ;;  %v1095_v13 = vmul.f32 0.70710677, %v1076_v8 }
 0x2e0   : > { %1836 = verf.f32 %v1092_v5  ;;  %v1094_v14 = vmul.f32 0.70710677, %v1001_v11  ;;  %v1096_v15 = vmul.f32 0.70710677, %v1078_v12  ;;  %v1086_v37 = vmul.f32 0.5, %v1001_v11 }
 0x2e1   : > { %1838 = verf.f32 %v1093_v9  ;;  %v1085_v39 = vmul.f32 0.5, %v999_v6  ;;  %v1088_v40 = vmul.f32 0.5, %v1078_v12  ;;  %v1087_v42 = vmul.f32 0.5, %v1076_v8 }
 0x2e2   : > { %1840 = verf.f32 %v1095_v13 }
 0x2e3   : > { %1842 = verf.f32 %v1094_v14 }
 0x2e4   : > { %1844 = verf.f32 %v1096_v15 }
 0x2e7   : > { %v1831_v16 = vpop.eup %1830 }
 0x2e8   : > { %v1833_v17 = vpop.eup %1832  ;;  %v1105_v19 = vadd.f32 1.0, %v1831_v16 }
 0x2e9   : > { %v1835_v18 = vpop.eup %1834  ;;  %v1107_v21 = vadd.f32 1.0, %v1833_v17 }
 0x2ea   : > { %v1837_v20 = vpop.eup %1836  ;;  %v1106_v23 = vadd.f32 1.0, %v1835_v18  ;;  %v1113_v31 = vmul.f32 %v1105_v19, %v1081_v25 }
 0x2eb   : > { %v1839_v24 = vpop.eup %1838  ;;  %v1108_v27 = vadd.f32 1.0, %v1837_v20  ;;  %v1115_v35 = vmul.f32 %v1107_v21, %v1083_v7 }
 0x2ec   : > { %v1841_v28 = vpop.eup %1840  ;;  %v1114_v29 = vmul.f32 %v1106_v23, %v1082_v22  ;;  %v1109_v33 = vadd.f32 1.0, %v1839_v24 }
 0x2ed   : > { %v1843_v30 = vpop.eup %1842  ;;  %v1116_v32 = vmul.f32 %v1108_v27, %v1084_v26  ;;  %v1111_v36 = vadd.f32 1.0, %v1841_v28 }
 0x2ee   : > { %v1845_v34 = vpop.eup %1844  ;;  %v1110_v38 = vadd.f32 1.0, %v1843_v30  ;;  %1325 = vmatprep.mubr.f32.mxu1 %v1114_v29  ;;  %v1117_v44 = vmul.f32 %v1109_v33, %v1085_v39 }
 0x2ef   : > { %v1112_v41 = vadd.f32 1.0, %v1845_v34  ;;  %1402 = vmatprep.mubr.f32.mxu0 %v1116_v32  ;;  %1326 = vmatmul.mubr.f32.vlgmr.msra.gmra.mrb[12].mxu1 %v1113_v31  ;;  %v1119_v46 = vmul.f32 %v1111_v36, %v1087_v42 }
 0x2f0   : > { %v1118_v43 = vmul.f32 %v1110_v38, %v1086_v37  ;;  %1403 = vmatmul.mubr.f32.vlgmr.msra.gmra.mrb[14].mxu0 %v1115_v35 }
 0x2f1   : > { %v1120_v45 = vmul.f32 %v1112_v41, %v1088_v40 }
 0x2f2   : > { %1331 = vmatprep.mubr.f32.mxu1 %v1118_v43 }
 0x2f3   : > { %1408 = vmatprep.mubr.f32.mxu0 %v1120_v45  ;;  %1332 = vmatmul.mubr.f32.gmra.mrb[14].mxu1 %v1117_v44 }
 0x2f4   : > { %1409 = vmatmul.mubr.f32.gmra.mrb[16].mxu0 %v1119_v46 }
 0x3c2   : > { %v1327_v52 = vpop.f32.mrb[12].mxu1 }
 0x3c3   : > { %v1328_v53 = vadd.f32 %v1327_v52, %v1254_v50  ;;  %v1404_v54 = vpop.f32.mrb[14].mxu0  ;;  %v1329_v55 = vpop.f32.mrb[13].mxu1 }
 0x3c4   : > { %v1330_v10 = vadd.f32 %v1329_v55, %v1258_v51  ;;  %v1406_v56 = vpop.f32.mrb[15].mxu0 }
 0x3c5   : > { %v1405_v57 = vadd.f32 %v1404_v54, %v1328_v53 }
 0x3c6   : > { %v1407_v58 = vadd.f32 %v1406_v56, %v1330_v10  ;;  %v1333_v59 = vpop.f32.mrb[14].mxu1 }
 0x3c7   : > { %1415 = vst [vmem:[%s359_s15] sm:$0xff] %v1405_v57  ;;  %v1334_v60 = vadd.f32 %v1333_v59, %v1254_v50  ;;  %v1410_v61 = vpop.f32.mrb[16].mxu0  ;;  %v1335_v1 = vpop.f32.mrb[15].mxu1 }
 0x3c8   : > { %1416 = vst [vmem:[%s359_s15 + $0x8] sm:$0xff] %v1407_v58  ;;  %v1336_v62 = vadd.f32 %v1335_v1, %v1258_v51  ;;  %v1412_v63 = vpop.f32.mrb[17].mxu0 }
 0x3c9   : > { %v1411_v0 = vadd.f32 %v1410_v61, %v1334_v60 }
 0x3ca   : > { %v1413_v2 = vadd.f32 %v1412_v63, %v1336_v62 }
 0x3cb   : > { %1417 = vst [vmem:[%s359_s15 + $0x10] sm:$0xff] %v1411_v0 }
 0x3cc   : > { %1418 = vst [vmem:[%s359_s15 + $0x18] sm:$0xff] %v1413_v2 }
 0x3cd PF: > { %s20_s13 = sadd.s32 1, %s1852_s13  }
 0x3ce   : > { %p17_p4 = scmp.ge.s32.totalorder %s20_s13, 4  }
 0x3d0   :  { %19 = sbr.rel (!%p17_p4) target bundleno = 1 (0x1), region = 90 }

</bundles_post_ra>
